<compile_context>
chip_gen: v7x
topology: tpu7x:2x2x1
jax: 0.10.0
libtpu: 0.0.40
codegen_flags: <defaults>
</compile_context>

<pallas_src>
import jax
import jax.numpy as jnp
from jax.experimental import pallas as pl
from jax.experimental.pallas import tpu as pltpu

F32 = jnp.float32
HI = jax.lax.Precision.HIGHEST


# ---------------------------------------------------------------------------
# Fused Pallas kernel: DiffusionNetBody (protein) + binding-site head
# ---------------------------------------------------------------------------
def _encoder_head_kernel(
        xyz_ref, feat_ref, w_xyz_ref, w_feat_ref, b_in_ref,
        evecs_m_ref, egg_ref, evals_ref, lig_row_ref,
        t_ref, wri_ref, w0x_ref, w0l_ref, w0d_ref, b0_ref,
        w1_ref, b1_ref, w2_ref, b2_ref,
        out_ref, x_ref):
    """One grid step == one DiffusionNetBlock; x is carried in VMEM scratch."""
    blk = pl.program_id(0)
    nblk = pl.num_programs(0)
    V, C = x_ref.shape

    # ---- step 0: normalize_positions (xyz only, eps-guarded) + input Linear
    @pl.when(blk == 0)
    def _init():
        xyz = xyz_ref[...]                                        # (V, 3)
        centered = xyz - jnp.mean(xyz, axis=0, keepdims=True)
        radius = jnp.sqrt(jnp.sum(centered * centered, axis=-1, keepdims=True))
        scale = jnp.maximum(jnp.max(radius), 1e-12)
        p = centered / scale
        x_ref[...] = (
            jnp.dot(p, w_xyz_ref[...], preferred_element_type=F32)
            + jnp.dot(feat_ref[...], w_feat_ref[...], preferred_element_type=F32)
            + b_in_ref[...])

    x = x_ref[...]                                                # (V, C)

    # ---- to_basis: (mass * evecs)^T @ x  (contract over V, no transposed copy)
    x_spec = jax.lax.dot_general(
        evecs_m_ref[...], x,
        dimension_numbers=(((0,), (0,)), ((), ())),
        preferred_element_type=F32)                               # (K, C)

    # ---- LaplacianBlock: exp(-evals * |t|) elementwise in the spectral domain
    coefs = jnp.exp(-evals_ref[...] * jnp.abs(t_ref[...]))        # (K,1)*(1,C)
    x_spec = coefs * x_spec

    # ---- from_basis + spectral gradients in ONE matmul: [evecs;gre;gim]@x_spec
    y = jnp.dot(egg_ref[...], x_spec, preferred_element_type=F32)  # (3V, C)
    x_lap = y[0:V, :]
    g_re = y[V:2 * V, :]
    g_im = y[2 * V:3 * V, :]

    # ---- PairwiseDot fused: [g_re; g_im] (2V,C) @ [A_re | A_im] (C,2C)
    pd = jnp.dot(y[V:3 * V, :], wri_ref[...], preferred_element_type=F32)
    b_re = pd[0:V, 0:C] - pd[V:2 * V, C:2 * C]
    b_im = pd[V:2 * V, 0:C] + pd[0:V, C:2 * C]
    dots = jnp.tanh(g_re * b_re + g_im * b_im)

    # ---- MiniMLP([3C, C, C, C]) on [x | x_lap | dots] without the concat
    h = (jnp.dot(x, w0x_ref[...], preferred_element_type=F32)
         + jnp.dot(x_lap, w0l_ref[...], preferred_element_type=F32)
         + jnp.dot(dots, w0d_ref[...], preferred_element_type=F32)
         + b0_ref[...])
    h = jnp.maximum(h, 0.0)
    h = jnp.maximum(
        jnp.dot(h, w1_ref[...], preferred_element_type=F32) + b1_ref[...], 0.0)
    x_new = jnp.dot(h, w2_ref[...], preferred_element_type=F32) + b2_ref[...] + x
    x_ref[...] = x_new                                            # residual out

    # ---- binding-site head fused into the final block (lane reduce on VPU)
    @pl.when(blk == nblk - 1)
    def _head():
        logits = jnp.sum(x_new * lig_row_ref[...], axis=-1, keepdims=True)
        out_ref[...] = jax.nn.sigmoid(logits)                     # (V, 1)


def protein_encoder_head_pallas(pc, ops, params, lig_row):
    """Whole protein path (encoder + head) as one pallas_call."""
    mass, evals, evecs, gre, gim = ops
    V, D = pc.shape
    C = params['b_in'].shape[-1]
    K = evecs.shape[-1]
    blocks = params['blocks']
    NB = len(blocks)

    # Split point cloud / input linear so only xyz is normalized (no in-kernel
    # lane-misaligned slicing or concat).
    xyz = pc[:, 0:3]
    if D > 3:
        feats = pc[:, 3:]
        w_xyz = params['w_in'][0:3]
        w_feat = params['w_in'][3:]
    else:
        feats = jnp.zeros((V, 1), F32)
        w_xyz = params['w_in']
        w_feat = jnp.zeros((1, C), F32)
    Df = feats.shape[1]

    # Operator preprocessing (once, in XLA): fold mass into evecs, stack the
    # from-basis / gradient operands into a single (3V, K) matrix.
    evecs_m = evecs * mass                                   # (V, K)
    egg = jnp.concatenate([evecs, gre, gim], axis=0)         # (3V, K)

    # Per-block weights, stacked along a leading (num_blocks, ...) axis.
    t_s = jnp.stack([b['t'] for b in blocks], axis=0)                     # (NB,1,C)
    wri_s = jnp.stack(
        [jnp.concatenate([b['a_re'], b['a_im']], axis=1) for b in blocks], axis=0)  # (NB,C,2C)
    w0_s = jnp.stack([b['w0'] for b in blocks], axis=0)                   # (NB,3C,C)
    w0x_s, w0l_s, w0d_s = w0_s[:, 0:C, :], w0_s[:, C:2 * C, :], w0_s[:, 2 * C:3 * C, :]
    b0_s = jnp.stack([b['b0'] for b in blocks], axis=0)
    w1_s = jnp.stack([b['w1'] for b in blocks], axis=0)
    b1_s = jnp.stack([b['b1'] for b in blocks], axis=0)
    w2_s = jnp.stack([b['w2'] for b in blocks], axis=0)
    b2_s = jnp.stack([b['b2'] for b in blocks], axis=0)

    res2 = lambda b: (0, 0)        # resident operands: DMA'd once, stay in VMEM
    blk3 = lambda b: (b, 0, 0)     # per-block stacked weights, streamed by grid

    in_specs = [
        pl.BlockSpec((V, 3), res2),              # xyz
        pl.BlockSpec((V, Df), res2),             # extra feature columns
        pl.BlockSpec((3, C), res2),              # input linear (xyz rows)
        pl.BlockSpec((Df, C), res2),             # input linear (feature rows)
        pl.BlockSpec((1, C), res2),              # input bias
        pl.BlockSpec((V, K), res2),              # mass-folded evecs (to_basis)
        pl.BlockSpec((3 * V, K), res2),          # [evecs; gre; gim]
        pl.BlockSpec((K, 1), res2),              # eigenvalues
        pl.BlockSpec((1, C), res2),              # ligand head vector (row)
        pl.BlockSpec((None, 1, C), blk3),        # diffusion time t
        pl.BlockSpec((None, C, 2 * C), blk3),    # [A_re | A_im]
        pl.BlockSpec((None, C, C), blk3),        # w0 slab for x
        pl.BlockSpec((None, C, C), blk3),        # w0 slab for x_lap
        pl.BlockSpec((None, C, C), blk3),        # w0 slab for dots
        pl.BlockSpec((None, 1, C), blk3),        # b0
        pl.BlockSpec((None, C, C), blk3),        # w1
        pl.BlockSpec((None, 1, C), blk3),        # b1
        pl.BlockSpec((None, C, C), blk3),        # w2
        pl.BlockSpec((None, 1, C), blk3),        # b2
    ]

    grid_spec = pltpu.PrefetchScalarGridSpec(
        num_scalar_prefetch=0,
        grid=(NB,),
        in_specs=in_specs,
        out_specs=pl.BlockSpec((V, 1), res2),
        scratch_shapes=[pltpu.VMEM((V, C), F32)],   # x persists across blocks
    )

    return pl.pallas_call(
        _encoder_head_kernel,
        out_shape=jax.ShapeDtypeStruct((V, 1), F32),
        grid_spec=grid_spec,
        compiler_params=pltpu.CompilerParams(
            dimension_semantics=("arbitrary",)),    # blocks are sequential
    )(xyz, feats, w_xyz, w_feat, params['b_in'],
      evecs_m, egg, evals, lig_row,
      t_s, wri_s, w0x_s, w0l_s, w0d_s, b0_s, w1_s, b1_s, w2_s, b2_s)


# ---------------------------------------------------------------------------
# Plain-XLA pieces (tiny ligand path) + full reference for self-checking
# ---------------------------------------------------------------------------
def _normalize_positions(pc):
    # geometry.normalize_positions: center + scale the xyz columns by the max
    # vertex norm (eps-guarded); extra feature channels pass through unchanged.
    xyz = pc[:, 0:3]
    centered = xyz - jnp.mean(xyz, axis=0, keepdims=True)
    radius = jnp.sqrt(jnp.sum(centered * centered, axis=-1, keepdims=True))
    scale = jnp.maximum(jnp.max(radius), 1e-12)
    xyz_n = centered / scale
    if pc.shape[1] > 3:
        return jnp.concatenate([xyz_n, pc[:, 3:]], axis=-1)
    return xyz_n


def encoder_xla(pc, ops, params):
    """DiffusionNetBody in plain XLA (ligand path + numerical reference)."""
    mass, evals, evecs, gre, gim = ops
    x = jnp.dot(_normalize_positions(pc), params['w_in'], precision=HI) + params['b_in']
    for blk in params['blocks']:
        x_spec = jnp.dot(evecs.T, mass * x, precision=HI)          # to_basis
        coefs = jnp.exp(-evals * jnp.abs(blk['t']))                 # LaplacianBlock
        x_spec = coefs * x_spec
        x_lap = jnp.dot(evecs, x_spec, precision=HI)                # from_basis
        g_re = jnp.dot(gre, x_spec, precision=HI)                   # cmatvecmul_stacked
        g_im = jnp.dot(gim, x_spec, precision=HI)
        b_re = jnp.dot(g_re, blk['a_re'], precision=HI) - jnp.dot(g_im, blk['a_im'], precision=HI)
        b_im = jnp.dot(g_im, blk['a_re'], precision=HI) + jnp.dot(g_re, blk['a_im'], precision=HI)
        dots = jnp.tanh(g_re * b_re + g_im * b_im)                  # PairwiseDot
        comb = jnp.concatenate([x, x_lap, dots], axis=-1)
        h = jax.nn.relu(jnp.dot(comb, blk['w0'], precision=HI) + blk['b0'])
        h = jax.nn.relu(jnp.dot(h, blk['w1'], precision=HI) + blk['b1'])
        x = jnp.dot(h, blk['w2'], precision=HI) + blk['b2'] + x
    return x


def ligand_head_vector(x_ligand, head):
    # ligand_linear_layer -> (Vl, 1)
    s = jnp.dot(x_ligand, head['w_lin'], precision=HI) + head['b_lin']
    # Conv1d(1, 32, 3, padding=2) on a length-1 sequence gives length-3 output
    #   out[v, c, t] = w[c, 2 - t] * s[v] + b[c],  t in {0, 1, 2}
    # followed directly by mean over (batch, length):
    #   mean_{v,t} out = mean_v(s) * mean_j(w[c, j]) + b[c]          (exact)
    s_mean = jnp.mean(s)
    w_mean = jnp.mean(head['w_conv'], axis=1, keepdims=True)         # (32, 1)
    return s_mean * w_mean + head['b_conv']                          # (32, 1)


def diffusion_net_binding_site(protein_pc, ligand_pc, ops_p, ops_l,
                               enc_p, enc_l, head):
    # Ligand encoder + conv head are sub-vreg sized -> plain XLA (no launches).
    xl = encoder_xla(ligand_pc, ops_l, enc_l)
    lig_vec = ligand_head_vector(xl, head)                 # (width, 1)
    lig_row = jnp.transpose(lig_vec)                       # (1, width)
    # Protein encoder + sigmoid head: one fused Pallas kernel.
    return protein_encoder_head_pallas(protein_pc, ops_p, enc_p, lig_row)


def reference_forward(protein_pc, ligand_pc, ops_p, ops_l, enc_p, enc_l, head):
    xp = encoder_xla(protein_pc, ops_p, enc_p)
    xl = encoder_xla(ligand_pc, ops_l, enc_l)
    lig_vec = ligand_head_vector(xl, head)
    return jax.nn.sigmoid(jnp.dot(xp, lig_vec, precision=HI))


# ---------------------------------------------------------------------------
# Deterministic parameters / synthetic operators
# ---------------------------------------------------------------------------
def _uniform(key, shape, scale=0.1):
    return jax.random.uniform(key, shape, F32, -scale, scale)


def make_encoder_params(key, input_size, width, num_blocks):
    keys = jax.random.split(key, 1 + num_blocks)
    k_in = jax.random.split(keys[0], 2)
    params = {
        'w_in': _uniform(k_in[0], (input_size, width)),   # Linear(input_size, width).T
        'b_in': _uniform(k_in[1], (1, width)),
        'blocks': [],
    }
    c_mlp = 3 * width                                     # pairwise_dot=True -> 3*C
    for i in range(num_blocks):
        ks = jax.random.split(keys[1 + i], 8)
        params['blocks'].append({
            't':    jnp.full((1, width), 1e-4, F32),      # nn.init.constant_(0.0001)
            'a_re': _uniform(ks[0], (width, width)),      # PairwiseDot A_re.T
            'a_im': _uniform(ks[1], (width, width)),      # PairwiseDot A_im.T
            'w0':   _uniform(ks[2], (c_mlp, width)),      # MiniMLP layer 0 (3C -> W)
            'b0':   _uniform(ks[3], (1, width)),
            'w1':   _uniform(ks[4], (width, width)),      # MiniMLP layer 1 (W -> W)
            'b1':   _uniform(ks[5], (1, width)),
            'w2':   _uniform(ks[6], (width, width)),      # MiniMLP layer 2 (W -> C)
            'b2':   _uniform(ks[7], (1, width)),
        })
    return params


def make_operators(key, V, K):
    # TODO(synk): geometry.compute_operators (point-cloud Laplacian + eigen-
    # decomposition) has no Pallas equivalent; deterministic synthetic
    # (mass, evals, evecs, grad_from_spectral) stand in for it.
    km, ke, kv, kg = jax.random.split(key, 4)
    mass = jax.random.uniform(km, (V, 1), F32, 0.5, 1.5)
    evals = jnp.sort(jax.random.uniform(ke, (K, 1), F32, 0.0, 10.0), axis=0)
    evecs = jax.random.normal(kv, (V, K), F32) / jnp.sqrt(jnp.asarray(V, F32))
    grad = jax.random.normal(kg, (V, K, 2), F32) * 0.1
    return mass, evals, evecs, grad[..., 0], grad[..., 1]


# ---------------------------------------------------------------------------
if __name__ == "__main__":
    key = jax.random.PRNGKey(0)
    k_pp, k_lp, k_po, k_lo, k_ep, k_el, k_head = jax.random.split(key, 7)

    INPUT_SIZE = 6       # point-cloud feature dim (first 3 cols = xyz)
    WIDTH = 32           # must equal Conv1d out_channels (32) for the head matmul
    NUM_BLOCKS = 4       # module default
    VP, KP = 64, 16      # protein: #points, #eigenvectors (small stand-ins)
    VL, KL = 16, 8       # ligand

    protein_pc = jax.random.normal(k_pp, (VP, INPUT_SIZE), F32)
    ligand_pc = jax.random.normal(k_lp, (VL, INPUT_SIZE), F32)

    ops_p = make_operators(k_po, VP, KP)
    ops_l = make_operators(k_lo, VL, KL)

    enc_p = make_encoder_params(k_ep, INPUT_SIZE, WIDTH, NUM_BLOCKS)
    enc_l = make_encoder_params(k_el, INPUT_SIZE, WIDTH, NUM_BLOCKS)

    kh = jax.random.split(k_head, 4)
    head = {
        'w_lin':  _uniform(kh[0], (WIDTH, 1)),    # ligand_linear_layer weight.T
        'b_lin':  _uniform(kh[1], (1, 1)),
        'w_conv': _uniform(kh[2], (32, 3)),       # Conv1d(1,32,3) weight (32,1,3) squeezed
        'b_conv': _uniform(kh[3], (32, 1)),
    }

    forward = jax.jit(diffusion_net_binding_site)
    out = jax.block_until_ready(
        forward(protein_pc, ligand_pc, ops_p, ops_l, enc_p, enc_l, head))

    # Plain-XLA reference of the full forward for a numerical self-check.
    ref = jax.block_until_ready(
        reference_forward(protein_pc, ligand_pc, ops_p, ops_l, enc_p, enc_l, head))

    assert out.shape == (VP, 1) and out.dtype == F32
    assert bool(jnp.all(jnp.isfinite(out)))
    assert bool(jnp.allclose(out, ref, atol=5e-3, rtol=0.0)), \
        float(jnp.max(jnp.abs(out - ref)))
    print("KERNEL_OK")
</pallas_src>

<mosaic_0001>
module attributes {stable_mosaic.version = 11 : i64} {
  func.func @_encoder_head_kernel(%arg0: i32, %arg1: memref<64x3xf32, #tpu.memory_space<vmem>>, %arg2: memref<64x3xf32, #tpu.memory_space<vmem>>, %arg3: memref<3x32xf32, #tpu.memory_space<vmem>>, %arg4: memref<3x32xf32, #tpu.memory_space<vmem>>, %arg5: memref<1x32xf32, #tpu.memory_space<vmem>>, %arg6: memref<64x16xf32, #tpu.memory_space<vmem>>, %arg7: memref<192x16xf32, #tpu.memory_space<vmem>>, %arg8: memref<16x1xf32, #tpu.memory_space<vmem>>, %arg9: memref<1x32xf32, #tpu.memory_space<vmem>>, %arg10: memref<1x1x32xf32, #tpu.memory_space<vmem>>, %arg11: memref<1x32x64xf32, #tpu.memory_space<vmem>>, %arg12: memref<1x32x32xf32, #tpu.memory_space<vmem>>, %arg13: memref<1x32x32xf32, #tpu.memory_space<vmem>>, %arg14: memref<1x32x32xf32, #tpu.memory_space<vmem>>, %arg15: memref<1x1x32xf32, #tpu.memory_space<vmem>>, %arg16: memref<1x32x32xf32, #tpu.memory_space<vmem>>, %arg17: memref<1x1x32xf32, #tpu.memory_space<vmem>>, %arg18: memref<1x32x32xf32, #tpu.memory_space<vmem>>, %arg19: memref<1x1x32xf32, #tpu.memory_space<vmem>>, %arg20: memref<64x1xf32, #tpu.memory_space<vmem>>, %arg21: memref<64x32xf32, #tpu.memory_space<vmem>>) attributes {dimension_semantics = [#tpu.dimension_semantics<arbitrary>], iteration_bounds = array<i64: 4>, scalar_prefetch = 0 : i64, scratch_operands = 1 : i64, tpu.core_type = #tpu.core_type<tc>, window_params = [{pipeline_mode = #tpu.pipeline_mode<synchronous>, transform_indices = @transform_0, window_bounds = array<i64: 64, 3>}, {pipeline_mode = #tpu.pipeline_mode<synchronous>, transform_indices = @transform_1, window_bounds = array<i64: 64, 3>}, {pipeline_mode = #tpu.pipeline_mode<synchronous>, transform_indices = @transform_2, window_bounds = array<i64: 3, 32>}, {pipeline_mode = #tpu.pipeline_mode<synchronous>, transform_indices = @transform_3, window_bounds = array<i64: 3, 32>}, {pipeline_mode = #tpu.pipeline_mode<synchronous>, transform_indices = @transform_4, window_bounds = array<i64: 1, 32>}, {pipeline_mode = #tpu.pipeline_mode<synchronous>, transform_indices = @transform_5, window_bounds = array<i64: 64, 16>}, {pipeline_mode = #tpu.pipeline_mode<synchronous>, transform_indices = @transform_6, window_bounds = array<i64: 192, 16>}, {pipeline_mode = #tpu.pipeline_mode<synchronous>, transform_indices = @transform_7, window_bounds = array<i64: 16, 1>}, {pipeline_mode = #tpu.pipeline_mode<synchronous>, transform_indices = @transform_8, window_bounds = array<i64: 1, 32>}, {transform_indices = @transform_9, window_bounds = array<i64: 1, 1, 32>}, {transform_indices = @transform_10, window_bounds = array<i64: 1, 32, 64>}, {transform_indices = @transform_11, window_bounds = array<i64: 1, 32, 32>}, {transform_indices = @transform_12, window_bounds = array<i64: 1, 32, 32>}, {transform_indices = @transform_13, window_bounds = array<i64: 1, 32, 32>}, {transform_indices = @transform_14, window_bounds = array<i64: 1, 1, 32>}, {transform_indices = @transform_15, window_bounds = array<i64: 1, 32, 32>}, {transform_indices = @transform_16, window_bounds = array<i64: 1, 1, 32>}, {transform_indices = @transform_17, window_bounds = array<i64: 1, 32, 32>}, {transform_indices = @transform_18, window_bounds = array<i64: 1, 1, 32>}, {pipeline_mode = #tpu.pipeline_mode<synchronous>, transform_indices = @transform_19, window_bounds = array<i64: 64, 1>}]} {
    %c0_i32 = arith.constant 0 : i32
    %0 = arith.cmpi eq, %arg0, %c0_i32 : i32
    %1 = arith.extui %0 : i1 to i32
    %c0_i32_0 = arith.constant 0 : i32
    %2 = arith.cmpi ne, %1, %c0_i32_0 : i32
    scf.if %2 {
      %c0_51 = arith.constant 0 : index
      %c0_52 = arith.constant 0 : index
      %74 = vector.load %arg1[%c0_51, %c0_52] : memref<64x3xf32, #tpu.memory_space<vmem>>, vector<64x3xf32>
      %cst_53 = arith.constant dense<0.000000e+00> : vector<3xf32>
      %75 = vector.multi_reduction <add>, %74, %cst_53 [0] : vector<64x3xf32> to vector<3xf32>
      %76 = vector.shape_cast %75 : vector<3xf32> to vector<1x3xf32>
      %cst_54 = arith.constant 6.400000e+01 : f32
      %77 = vector.broadcast %cst_54 : f32 to vector<1x3xf32>
      %78 = arith.divf %76, %77 : vector<1x3xf32>
      %79 = vector.broadcast %78 : vector<1x3xf32> to vector<64x3xf32>
      %80 = arith.subf %74, %79 : vector<64x3xf32>
      %81 = arith.mulf %80, %80 : vector<64x3xf32>
      %cst_55 = arith.constant dense<0.000000e+00> : vector<64xf32>
      %82 = vector.multi_reduction <add>, %81, %cst_55 [1] : vector<64x3xf32> to vector<64xf32>
      %83 = vector.shape_cast %82 : vector<64xf32> to vector<64x1xf32>
      %84 = math.sqrt %83 : vector<64x1xf32>
      %85 = vector.shape_cast %84 : vector<64x1xf32> to vector<1x64x1xf32>
      %cst_56 = arith.constant dense<0xFF800000> : vector<1xf32>
      %86 = vector.multi_reduction <maximumf>, %85, %cst_56 [1, 2] : vector<1x64x1xf32> to vector<1xf32>
      %87 = vector.shape_cast %86 : vector<1xf32> to vector<1x1x1xf32>
      %88 = vector.extract %87[0, 0, 0] : f32 from vector<1x1x1xf32>
      %cst_57 = arith.constant 9.99999996E-13 : f32
      %89 = arith.maximumf %88, %cst_57 : f32
      %90 = vector.broadcast %89 : f32 to vector<64x3xf32>
      %91 = arith.divf %80, %90 : vector<64x3xf32>
      %c0_58 = arith.constant 0 : index
      %c0_59 = arith.constant 0 : index
      %92 = vector.load %arg3[%c0_58, %c0_59] : memref<3x32xf32, #tpu.memory_space<vmem>>, vector<3x32xf32>
      %cst_60 = arith.constant dense<0.000000e+00> : vector<64x32xf32>
      %93 = tpu.matmul %91, %92, %cst_60 {dimension_numbers = #tpu.dot_dimension_numbers<[1], [0], [0], [1], [0, 0, 1, 1], [], []>} : vector<64x3xf32>, vector<3x32xf32>, vector<64x32xf32> -> vector<64x32xf32>
      %c0_61 = arith.constant 0 : index
      %c0_62 = arith.constant 0 : index
      %94 = vector.load %arg2[%c0_61, %c0_62] : memref<64x3xf32, #tpu.memory_space<vmem>>, vector<64x3xf32>
      %c0_63 = arith.constant 0 : index
      %c0_64 = arith.constant 0 : index
      %95 = vector.load %arg4[%c0_63, %c0_64] : memref<3x32xf32, #tpu.memory_space<vmem>>, vector<3x32xf32>
      %cst_65 = arith.constant dense<0.000000e+00> : vector<64x32xf32>
      %96 = tpu.matmul %94, %95, %cst_65 {dimension_numbers = #tpu.dot_dimension_numbers<[1], [0], [0], [1], [0, 0, 1, 1], [], []>} : vector<64x3xf32>, vector<3x32xf32>, vector<64x32xf32> -> vector<64x32xf32>
      %97 = arith.addf %93, %96 : vector<64x32xf32>
      %c0_66 = arith.constant 0 : index
      %c0_67 = arith.constant 0 : index
      %98 = vector.load %arg5[%c0_66, %c0_67] : memref<1x32xf32, #tpu.memory_space<vmem>>, vector<1x32xf32>
      %99 = vector.broadcast %98 : vector<1x32xf32> to vector<64x32xf32>
      %100 = arith.addf %97, %99 : vector<64x32xf32>
      %c0_68 = arith.constant 0 : index
      %c0_69 = arith.constant 0 : index
      %101 = vector.load %arg21[%c0_68, %c0_69] : memref<64x32xf32, #tpu.memory_space<vmem>>, vector<64x32xf32>
      tpu.vector_store %arg21[%c0_68, %c0_69], %100 {strides = array<i32>} : memref<64x32xf32, #tpu.memory_space<vmem>>, vector<64x32xf32>,
    } else {
    }
    %c0 = arith.constant 0 : index
    %c0_1 = arith.constant 0 : index
    %3 = vector.load %arg21[%c0, %c0_1] : memref<64x32xf32, #tpu.memory_space<vmem>>, vector<64x32xf32>
    %c0_2 = arith.constant 0 : index
    %c0_3 = arith.constant 0 : index
    %4 = vector.load %arg6[%c0_2, %c0_3] : memref<64x16xf32, #tpu.memory_space<vmem>>, vector<64x16xf32>
    %cst = arith.constant dense<0.000000e+00> : vector<16x32xf32>
    %5 = tpu.matmul %4, %3, %cst {dimension_numbers = #tpu.dot_dimension_numbers<[0], [0], [1], [1], [0, 1, 1, 1], [], []>} : vector<64x16xf32>, vector<64x32xf32>, vector<16x32xf32> -> vector<16x32xf32>
    %c0_4 = arith.constant 0 : index
    %c0_5 = arith.constant 0 : index
    %6 = vector.load %arg8[%c0_4, %c0_5] : memref<16x1xf32, #tpu.memory_space<vmem>>, vector<16x1xf32>
    %cst_6 = arith.constant 0.000000e+00 : f32
    %7 = vector.broadcast %cst_6 : f32 to vector<16x1xf32>
    %8 = arith.subf %7, %6 : vector<16x1xf32>
    %c0_7 = arith.constant 0 : index
    %c0_8 = arith.constant 0 : index
    %c0_9 = arith.constant 0 : index
    %9 = vector.load %arg10[%c0_7, %c0_8, %c0_9] : memref<1x1x32xf32, #tpu.memory_space<vmem>>, vector<1x1x32xf32>
    %10 = vector.shape_cast %9 : vector<1x1x32xf32> to vector<1x32xf32>
    %11 = math.absf %10 : vector<1x32xf32>
    %12 = vector.broadcast %8 : vector<16x1xf32> to vector<16x32xf32>
    %13 = vector.broadcast %11 : vector<1x32xf32> to vector<16x32xf32>
    %14 = arith.mulf %12, %13 : vector<16x32xf32>
    %15 = math.exp %14 : vector<16x32xf32>
    %16 = arith.mulf %15, %5 : vector<16x32xf32>
    %c0_10 = arith.constant 0 : index
    %c0_11 = arith.constant 0 : index
    %17 = vector.load %arg7[%c0_10, %c0_11] : memref<192x16xf32, #tpu.memory_space<vmem>>, vector<192x16xf32>
    %cst_12 = arith.constant dense<0.000000e+00> : vector<192x32xf32>
    %18 = tpu.matmul %17, %16, %cst_12 {dimension_numbers = #tpu.dot_dimension_numbers<[1], [0], [0], [1], [0, 0, 1, 1], [], []>} : vector<192x16xf32>, vector<16x32xf32>, vector<192x32xf32> -> vector<192x32xf32>
    %19 = vector.extract_strided_slice %18 {offsets = [0, 0], sizes = [64, 32], strides = [1, 1]} : vector<192x32xf32> to vector<64x32xf32>
    %20 = vector.extract_strided_slice %18 {offsets = [64, 0], sizes = [64, 32], strides = [1, 1]} : vector<192x32xf32> to vector<64x32xf32>
    %21 = vector.extract_strided_slice %18 {offsets = [128, 0], sizes = [64, 32], strides = [1, 1]} : vector<192x32xf32> to vector<64x32xf32>
    %22 = vector.extract_strided_slice %18 {offsets = [64, 0], sizes = [128, 32], strides = [1, 1]} : vector<192x32xf32> to vector<128x32xf32>
    %c0_13 = arith.constant 0 : index
    %c0_14 = arith.constant 0 : index
    %c0_15 = arith.constant 0 : index
    %23 = vector.load %arg11[%c0_13, %c0_14, %c0_15] : memref<1x32x64xf32, #tpu.memory_space<vmem>>, vector<1x32x64xf32>
    %24 = vector.shape_cast %23 : vector<1x32x64xf32> to vector<32x64xf32>
    %cst_16 = arith.constant dense<0.000000e+00> : vector<128x64xf32>
    %25 = tpu.matmul %22, %24, %cst_16 {dimension_numbers = #tpu.dot_dimension_numbers<[1], [0], [0], [1], [0, 0, 1, 1], [], []>} : vector<128x32xf32>, vector<32x64xf32>, vector<128x64xf32> -> vector<128x64xf32>
    %26 = vector.extract_strided_slice %25 {offsets = [0, 0], sizes = [64, 32], strides = [1, 1]} : vector<128x64xf32> to vector<64x32xf32>
    %27 = vector.extract_strided_slice %25 {offsets = [64, 32], sizes = [64, 32], strides = [1, 1]} : vector<128x64xf32> to vector<64x32xf32>
    %28 = arith.subf %26, %27 : vector<64x32xf32>
    %29 = vector.extract_strided_slice %25 {offsets = [64, 0], sizes = [64, 32], strides = [1, 1]} : vector<128x64xf32> to vector<64x32xf32>
    %30 = vector.extract_strided_slice %25 {offsets = [0, 32], sizes = [64, 32], strides = [1, 1]} : vector<128x64xf32> to vector<64x32xf32>
    %31 = arith.addf %29, %30 : vector<64x32xf32>
    %32 = arith.mulf %20, %28 : vector<64x32xf32>
    %33 = arith.mulf %21, %31 : vector<64x32xf32>
    %34 = arith.addf %32, %33 : vector<64x32xf32>
    %35 = math.tanh %34 : vector<64x32xf32>
    %c0_17 = arith.constant 0 : index
    %c0_18 = arith.constant 0 : index
    %c0_19 = arith.constant 0 : index
    %36 = vector.load %arg12[%c0_17, %c0_18, %c0_19] : memref<1x32x32xf32, #tpu.memory_space<vmem>>, vector<1x32x32xf32>
    %37 = vector.shape_cast %36 : vector<1x32x32xf32> to vector<32x32xf32>
    %cst_20 = arith.constant dense<0.000000e+00> : vector<64x32xf32>
    %38 = tpu.matmul %3, %37, %cst_20 {dimension_numbers = #tpu.dot_dimension_numbers<[1], [0], [0], [1], [0, 0, 1, 1], [], []>} : vector<64x32xf32>, vector<32x32xf32>, vector<64x32xf32> -> vector<64x32xf32>
    %c0_21 = arith.constant 0 : index
    %c0_22 = arith.constant 0 : index
    %c0_23 = arith.constant 0 : index
    %39 = vector.load %arg13[%c0_21, %c0_22, %c0_23] : memref<1x32x32xf32, #tpu.memory_space<vmem>>, vector<1x32x32xf32>
    %40 = vector.shape_cast %39 : vector<1x32x32xf32> to vector<32x32xf32>
    %cst_24 = arith.constant dense<0.000000e+00> : vector<64x32xf32>
    %41 = tpu.matmul %19, %40, %cst_24 {dimension_numbers = #tpu.dot_dimension_numbers<[1], [0], [0], [1], [0, 0, 1, 1], [], []>} : vector<64x32xf32>, vector<32x32xf32>, vector<64x32xf32> -> vector<64x32xf32>
    %42 = arith.addf %38, %41 : vector<64x32xf32>
    %c0_25 = arith.constant 0 : index
    %c0_26 = arith.constant 0 : index
    %c0_27 = arith.constant 0 : index
    %43 = vector.load %arg14[%c0_25, %c0_26, %c0_27] : memref<1x32x32xf32, #tpu.memory_space<vmem>>, vector<1x32x32xf32>
    %44 = vector.shape_cast %43 : vector<1x32x32xf32> to vector<32x32xf32>
    %cst_28 = arith.constant dense<0.000000e+00> : vector<64x32xf32>
    %45 = tpu.matmul %35, %44, %cst_28 {dimension_numbers = #tpu.dot_dimension_numbers<[1], [0], [0], [1], [0, 0, 1, 1], [], []>} : vector<64x32xf32>, vector<32x32xf32>, vector<64x32xf32> -> vector<64x32xf32>
    %46 = arith.addf %42, %45 : vector<64x32xf32>
    %c0_29 = arith.constant 0 : index
    %c0_30 = arith.constant 0 : index
    %c0_31 = arith.constant 0 : index
    %47 = vector.load %arg15[%c0_29, %c0_30, %c0_31] : memref<1x1x32xf32, #tpu.memory_space<vmem>>, vector<1x1x32xf32>
    %48 = vector.shape_cast %47 : vector<1x1x32xf32> to vector<1x32xf32>
    %49 = vector.broadcast %48 : vector<1x32xf32> to vector<64x32xf32>
    %50 = arith.addf %46, %49 : vector<64x32xf32>
    %cst_32 = arith.constant 0.000000e+00 : f32
    %51 = vector.broadcast %cst_32 : f32 to vector<64x32xf32>
    %52 = arith.maximumf %50, %51 : vector<64x32xf32>
    %c0_33 = arith.constant 0 : index
    %c0_34 = arith.constant 0 : index
    %c0_35 = arith.constant 0 : index
    %53 = vector.load %arg16[%c0_33, %c0_34, %c0_35] : memref<1x32x32xf32, #tpu.memory_space<vmem>>, vector<1x32x32xf32>
    %54 = vector.shape_cast %53 : vector<1x32x32xf32> to vector<32x32xf32>
    %cst_36 = arith.constant dense<0.000000e+00> : vector<64x32xf32>
    %55 = tpu.matmul %52, %54, %cst_36 {dimension_numbers = #tpu.dot_dimension_numbers<[1], [0], [0], [1], [0, 0, 1, 1], [], []>} : vector<64x32xf32>, vector<32x32xf32>, vector<64x32xf32> -> vector<64x32xf32>
    %c0_37 = arith.constant 0 : index
    %c0_38 = arith.constant 0 : index
    %c0_39 = arith.constant 0 : index
    %56 = vector.load %arg17[%c0_37, %c0_38, %c0_39] : memref<1x1x32xf32, #tpu.memory_space<vmem>>, vector<1x1x32xf32>
    %57 = vector.shape_cast %56 : vector<1x1x32xf32> to vector<1x32xf32>
    %58 = vector.broadcast %57 : vector<1x32xf32> to vector<64x32xf32>
    %59 = arith.addf %55, %58 : vector<64x32xf32>
    %cst_40 = arith.constant 0.000000e+00 : f32
    %60 = vector.broadcast %cst_40 : f32 to vector<64x32xf32>
    %61 = arith.maximumf %59, %60 : vector<64x32xf32>
    %c0_41 = arith.constant 0 : index
    %c0_42 = arith.constant 0 : index
    %c0_43 = arith.constant 0 : index
    %62 = vector.load %arg18[%c0_41, %c0_42, %c0_43] : memref<1x32x32xf32, #tpu.memory_space<vmem>>, vector<1x32x32xf32>
    %63 = vector.shape_cast %62 : vector<1x32x32xf32> to vector<32x32xf32>
    %cst_44 = arith.constant dense<0.000000e+00> : vector<64x32xf32>
    %64 = tpu.matmul %61, %63, %cst_44 {dimension_numbers = #tpu.dot_dimension_numbers<[1], [0], [0], [1], [0, 0, 1, 1], [], []>} : vector<64x32xf32>, vector<32x32xf32>, vector<64x32xf32> -> vector<64x32xf32>
    %c0_45 = arith.constant 0 : index
    %c0_46 = arith.constant 0 : index
    %c0_47 = arith.constant 0 : index
    %65 = vector.load %arg19[%c0_45, %c0_46, %c0_47] : memref<1x1x32xf32, #tpu.memory_space<vmem>>, vector<1x1x32xf32>
    %66 = vector.shape_cast %65 : vector<1x1x32xf32> to vector<1x32xf32>
    %67 = vector.broadcast %66 : vector<1x32xf32> to vector<64x32xf32>
    %68 = arith.addf %64, %67 : vector<64x32xf32>
    %69 = arith.addf %68, %3 : vector<64x32xf32>
    %c0_48 = arith.constant 0 : index
    %c0_49 = arith.constant 0 : index
    %70 = vector.load %arg21[%c0_48, %c0_49] : memref<64x32xf32, #tpu.memory_space<vmem>>, vector<64x32xf32>
    tpu.vector_store %arg21[%c0_48, %c0_49], %69 {strides = array<i32>} : memref<64x32xf32, #tpu.memory_space<vmem>>, vector<64x32xf32>,
    %c3_i32 = arith.constant 3 : i32
    %71 = arith.cmpi eq, %arg0, %c3_i32 : i32
    %72 = arith.extui %71 : i1 to i32
    %c0_i32_50 = arith.constant 0 : i32
    %73 = arith.cmpi ne, %72, %c0_i32_50 : i32
    scf.if %73 {
      %c0_51 = arith.constant 0 : index
      %c0_52 = arith.constant 0 : index
      %74 = vector.load %arg9[%c0_51, %c0_52] : memref<1x32xf32, #tpu.memory_space<vmem>>, vector<1x32xf32>
      %75 = vector.broadcast %74 : vector<1x32xf32> to vector<64x32xf32>
      %76 = arith.mulf %69, %75 : vector<64x32xf32>
      %cst_53 = arith.constant dense<0.000000e+00> : vector<64xf32>
      %77 = vector.multi_reduction <add>, %76, %cst_53 [1] : vector<64x32xf32> to vector<64xf32>
      %78 = vector.shape_cast %77 : vector<64xf32> to vector<64x1xf32>
      %79 = arith.negf %78 : vector<64x1xf32>
      %80 = math.exp %79 : vector<64x1xf32>
      %cst_54 = arith.constant 1.000000e+00 : f32
      %81 = vector.broadcast %cst_54 : f32 to vector<64x1xf32>
      %82 = arith.addf %81, %80 : vector<64x1xf32>
      %83 = arith.divf %81, %82 : vector<64x1xf32>
      %c0_55 = arith.constant 0 : index
      %c0_56 = arith.constant 0 : index
      %84 = vector.load %arg20[%c0_55, %c0_56] : memref<64x1xf32, #tpu.memory_space<vmem>>, vector<64x1xf32>
      tpu.vector_store %arg20[%c0_55, %c0_56], %83 {strides = array<i32>} : memref<64x1xf32, #tpu.memory_space<vmem>>, vector<64x1xf32>,
    } else {
    }
    return
  }
  func.func @transform_0(%arg0: i32) -> (i32, i32) {
    %c0_i32 = arith.constant 0 : i32
    %c0_i32_0 = arith.constant 0 : i32
    %c0_i32_1 = arith.constant 0 : i32
    return %c0_i32, %c0_i32_0 : i32, i32
  }
  func.func @transform_1(%arg0: i32) -> (i32, i32) {
    %c0_i32 = arith.constant 0 : i32
    %c0_i32_0 = arith.constant 0 : i32
    %c0_i32_1 = arith.constant 0 : i32
    return %c0_i32, %c0_i32_0 : i32, i32
  }
  func.func @transform_2(%arg0: i32) -> (i32, i32) {
    %c0_i32 = arith.constant 0 : i32
    %c0_i32_0 = arith.constant 0 : i32
    %c0_i32_1 = arith.constant 0 : i32
    return %c0_i32, %c0_i32_0 : i32, i32
  }
  func.func @transform_3(%arg0: i32) -> (i32, i32) {
    %c0_i32 = arith.constant 0 : i32
    %c0_i32_0 = arith.constant 0 : i32
    %c0_i32_1 = arith.constant 0 : i32
    return %c0_i32, %c0_i32_0 : i32, i32
  }
  func.func @transform_4(%arg0: i32) -> (i32, i32) {
    %c0_i32 = arith.constant 0 : i32
    %c0_i32_0 = arith.constant 0 : i32
    %c0_i32_1 = arith.constant 0 : i32
    return %c0_i32, %c0_i32_0 : i32, i32
  }
  func.func @transform_5(%arg0: i32) -> (i32, i32) {
    %c0_i32 = arith.constant 0 : i32
    %c0_i32_0 = arith.constant 0 : i32
    %c0_i32_1 = arith.constant 0 : i32
    return %c0_i32, %c0_i32_0 : i32, i32
  }
  func.func @transform_6(%arg0: i32) -> (i32, i32) {
    %c0_i32 = arith.constant 0 : i32
    %c0_i32_0 = arith.constant 0 : i32
    %c0_i32_1 = arith.constant 0 : i32
    return %c0_i32, %c0_i32_0 : i32, i32
  }
  func.func @transform_7(%arg0: i32) -> (i32, i32) {
    %c0_i32 = arith.constant 0 : i32
    %c0_i32_0 = arith.constant 0 : i32
    %c0_i32_1 = arith.constant 0 : i32
    return %c0_i32, %c0_i32_0 : i32, i32
  }
  func.func @transform_8(%arg0: i32) -> (i32, i32) {
    %c0_i32 = arith.constant 0 : i32
    %c0_i32_0 = arith.constant 0 : i32
    %c0_i32_1 = arith.constant 0 : i32
    return %c0_i32, %c0_i32_0 : i32, i32
  }
  func.func @transform_9(%arg0: i32) -> (i32, i32, i32) {
    %c0_i32 = arith.constant 0 : i32
    %c0_i32_0 = arith.constant 0 : i32
    %c0_i32_1 = arith.constant 0 : i32
    return %arg0, %c0_i32, %c0_i32_0 : i32, i32, i32
  }
  func.func @transform_10(%arg0: i32) -> (i32, i32, i32) {
    %c0_i32 = arith.constant 0 : i32
    %c0_i32_0 = arith.constant 0 : i32
    %c0_i32_1 = arith.constant 0 : i32
    return %arg0, %c0_i32, %c0_i32_0 : i32, i32, i32
  }
  func.func @transform_11(%arg0: i32) -> (i32, i32, i32) {
    %c0_i32 = arith.constant 0 : i32
    %c0_i32_0 = arith.constant 0 : i32
    %c0_i32_1 = arith.constant 0 : i32
    return %arg0, %c0_i32, %c0_i32_0 : i32, i32, i32
  }
  func.func @transform_12(%arg0: i32) -> (i32, i32, i32) {
    %c0_i32 = arith.constant 0 : i32
    %c0_i32_0 = arith.constant 0 : i32
    %c0_i32_1 = arith.constant 0 : i32
    return %arg0, %c0_i32, %c0_i32_0 : i32, i32, i32
  }
  func.func @transform_13(%arg0: i32) -> (i32, i32, i32) {
    %c0_i32 = arith.constant 0 : i32
    %c0_i32_0 = arith.constant 0 : i32
    %c0_i32_1 = arith.constant 0 : i32
    return %arg0, %c0_i32, %c0_i32_0 : i32, i32, i32
  }
  func.func @transform_14(%arg0: i32) -> (i32, i32, i32) {
    %c0_i32 = arith.constant 0 : i32
    %c0_i32_0 = arith.constant 0 : i32
    %c0_i32_1 = arith.constant 0 : i32
    return %arg0, %c0_i32, %c0_i32_0 : i32, i32, i32
  }
  func.func @transform_15(%arg0: i32) -> (i32, i32, i32) {
    %c0_i32 = arith.constant 0 : i32
    %c0_i32_0 = arith.constant 0 : i32
    %c0_i32_1 = arith.constant 0 : i32
    return %arg0, %c0_i32, %c0_i32_0 : i32, i32, i32
  }
  func.func @transform_16(%arg0: i32) -> (i32, i32, i32) {
    %c0_i32 = arith.constant 0 : i32
    %c0_i32_0 = arith.constant 0 : i32
    %c0_i32_1 = arith.constant 0 : i32
    return %arg0, %c0_i32, %c0_i32_0 : i32, i32, i32
  }
  func.func @transform_17(%arg0: i32) -> (i32, i32, i32) {
    %c0_i32 = arith.constant 0 : i32
    %c0_i32_0 = arith.constant 0 : i32
    %c0_i32_1 = arith.constant 0 : i32
    return %arg0, %c0_i32, %c0_i32_0 : i32, i32, i32
  }
  func.func @transform_18(%arg0: i32) -> (i32, i32, i32) {
    %c0_i32 = arith.constant 0 : i32
    %c0_i32_0 = arith.constant 0 : i32
    %c0_i32_1 = arith.constant 0 : i32
    return %arg0, %c0_i32, %c0_i32_0 : i32, i32, i32
  }
  func.func @transform_19(%arg0: i32) -> (i32, i32) {
    %c0_i32 = arith.constant 0 : i32
    %c0_i32_0 = arith.constant 0 : i32
    %c0_i32_1 = arith.constant 0 : i32
    return %c0_i32, %c0_i32_0 : i32, i32
  }
}

</mosaic_0001>

<bundles_post_ra>
// kernel: diffusion_net_binding_site.1
= control target key start
LH: loop header
LB: loop body
LE: loop exit
PB: predicated region body
PF: predicated region fallthrough
CT: control target
= control target key end

     0   :  { %s4380_s0 = inlined_call_operand.vmem [shape: f32[64,3], index: 0, kind: input, shape index: {}]   ;;  %s4381_s1 = inlined_call_operand.vmem [shape: f32[64,3], index: 1, kind: input, shape index: {}]   ;;  %s4382_s2 = inlined_call_operand.vmem [shape: f32[3,32], index: 2, kind: input, shape index: {}]   ;;  %s4383_s3 = inlined_call_operand.vmem [shape: f32[3,32], index: 3, kind: input, shape index: {}]   ;;  %s4384_s4 = inlined_call_operand.vmem [shape: f32[1,32], index: 4, kind: input, shape index: {}]   ;;  %s4385_s5 = inlined_call_operand.vmem [shape: f32[64,16], index: 5, kind: input, shape index: {}]   ;;  %s4386_s6 = inlined_call_operand.vmem [shape: f32[192,16], index: 6, kind: input, shape index: {}]   ;;  %s4387_s7 = inlined_call_operand.vmem [shape: f32[16,1], index: 7, kind: input, shape index: {}]   ;;  %s4388_s8 = inlined_call_operand.vmem [shape: f32[1,32], index: 8, kind: input, shape index: {}]   ;;  %s4389_s9 = inlined_call_operand.vmem [shape: f32[4,1,32], index: 9, kind: input, shape index: {}]   ;;  %s4390_s10 = inlined_call_operand.vmem [shape: f32[4,32,64], index: 10, kind: input, shape index: {}]   ;;  %s4391_s11 = inlined_call_operand.vmem [shape: f32[4,32,32], index: 11, kind: input, shape index: {}]   ;;  %s4392_s12 = inlined_call_operand.vmem [shape: f32[4,32,32], index: 12, kind: input, shape index: {}]   ;;  %s4393_s13 = inlined_call_operand.vmem [shape: f32[4,32,32], index: 13, kind: input, shape index: {}]   ;;  %s4394_s14 = inlined_call_operand.vmem [shape: f32[4,1,32], index: 14, kind: input, shape index: {}]   ;;  %s4395_s15 = inlined_call_operand.vmem [shape: f32[4,32,32], index: 15, kind: input, shape index: {}]   ;;  %s4396_s16 = inlined_call_operand.vmem [shape: f32[4,1,32], index: 16, kind: input, shape index: {}]   ;;  %s4397_s17 = inlined_call_operand.vmem [shape: f32[4,32,32], index: 17, kind: input, shape index: {}]   ;;  %s4398_s18 = inlined_call_operand.vmem [shape: f32[4,1,32], index: 18, kind: input, shape index: {}]   ;;  %s4399_s19 = inlined_call_operand.vmem [shape: f32[64,1], index: 19, kind: output, shape index: {}]  }
   0x1   :  { %4405 = sst [smem:[#allocation5_spill]] %s4380_s0  ;;  %s3693_s0 = smov 0  }
   0x2   :  { %4406 = sst [smem:[#allocation6_spill]] %s4381_s1 }
   0x3   :  { %4407 = sst [smem:[#allocation7_spill]] %s4382_s2 }
   0x4   :  { %4408 = sst [smem:[#allocation8_spill]] %s4383_s3 }
   0x5   :  { %4409 = sst [smem:[#allocation9_spill]] %s4388_s8 }
   0x6   :  { %4410 = sst [smem:[#allocation10_spill]] %s4390_s10 }
   0x7   :  { %4411 = sst [smem:[#allocation11_spill]] %s4391_s11 }
   0x8   :  { %4412 = sst [smem:[#allocation12_spill]] %s4392_s12 }
   0x9   :  { %4413 = sst [smem:[#allocation13_spill]] %s4393_s13 }
   0xa   :  { %4414 = sst [smem:[#allocation14_spill]] %s4399_s19 }
   0xb LB: > { %4415 = sst [smem:[#allocation3_spill]] %s3588_s0  ;;  %s3699_s30 = sadd.s32 4294967295, %s3588_s0   ;;  %s3588_s0 = sphi %s3693_s0, %s29_s0  }
   0xc   : > { %p2913_p0 = scmp.ge.s32.totalorder %s3588_s0, 1  ;;  %p614_p1 = scmp.lt.s32.totalorder %s3588_s0, 5 }
   0xe   : > { %p615_p2 = pnand %p2913_p0, %p614_p1 }
  0x10   : > { %618 = sbr.rel (%p615_p2) target bundleno = 2369 (0x941), region = 96 }
  0x17   : > { %p702_p3 = scmp.lt.s32.totalorder %s3699_s30, 3  ;;  %s4416_s10 = sld [smem:[#allocation10_spill]] }
  0x18   : > { %s4417_s11 = sld [smem:[#allocation11_spill]]  ;;  %s4419_s12 = sld [smem:[#allocation12_spill]] }
  0x19   : > { %s3705_s20 = scalar_select %p702_p3, %s3699_s30, 3 }
  0x1a   : > { %s4420_s13 = sld [smem:[#allocation13_spill]]  ;;  %p2926_p4 = scmp.ne.s32.totalorder %s3699_s30, 0 }
  0x1b   : > { %s3043_s2 = sshll.u32 %s3705_s20, 5  ;;  %s735_s28 = scalar_lea.vmem %s4396_s16, %s3705_s20  ;;  %vm756_vm0 = vcmask (!%p2926_p4), 23552   ;;  %vm935_vm1 = vcmask (!%p2926_p4), 1042432  }
  0x1c   : > { %s3739_s3 = scalar_lea.vmem %s4395_s15, %s3043_s2  ;;  %747 = sbr.rel (%p2926_p4) target bundleno = 554 (0x22a), region = 100 }
  0x1d   : > { %s3715_s25 = scalar_lea.vmem %s4416_s10, %s3043_s2  ;;  %s4421_s19 = sld [smem:[#allocation5_spill]] (!%p2926_p4) }
  0x1e   : > { %s3720_s27 = scalar_lea.vmem %s4417_s11, %s3043_s2  ;;  %s3725_s21 = scalar_lea.vmem %s4419_s12, %s3043_s2 }
  0x1f   : > { %4418 = sst [smem:[#allocation4_spill]] %s3720_s27  ;;  %s3748_s27 = scalar_lea.vmem %s4397_s17, %s3043_s2 }
  0x20   : > { %s3730_s22 = scalar_lea.vmem %s4420_s13, %s3043_s2  ;;  %s743_s13 = scalar_lea.vmem %s4398_s18, %s3705_s20 }
  0x21   : > { %s4422_s2 = sld [smem:[#allocation8_spill]] (!%p2926_p4)  ;;  %s4423_s23 = sld [smem:[#allocation6_spill]] (!%p2926_p4) }
  0x22   : > { %s4424_s10 = sld [smem:[#allocation7_spill]] (!%p2926_p4)  ;;  %s3590_s29 = smov (!%p2926_p4), 1e-12  }
  0x23   : > { %v748_v0 = vld [vmem:[%s4421_s19] sm:$0xff]  ;;  %v749_v1 = vld [vmem:[%s4421_s19 + $0x8] sm:$0xff]  ;;  %v750_v2 = vld [vmem:[%s4421_s19 + $0x10] sm:$0xff] }
  0x24   : > { %v751_v3 = vld [vmem:[%s4421_s19 + $0x18] sm:$0xff]  ;;  %v757_v4 = vsel %vm756_vm0, %v748_v0, 0.0  ;;  %v758_v5 = vsel %vm756_vm0, %v749_v1, 0.0  ;;  %v760_v6 = vsel %vm756_vm0, %v750_v2, 0.0  ;;  %v752_v7 = vld [vmem:[%s4421_s19 + $0x20] sm:$0xff]  ;;  %v753_v10 = vld [vmem:[%s4421_s19 + $0x28] sm:$0xff] }
  0x25   : > { %v759_v8 = vadd.f32 %v758_v5, %v757_v4  ;;  %v762_v9 = vsel %vm756_vm0, %v751_v3, 0.0  ;;  %v764_v12 = vsel %vm756_vm0, %v752_v7, 0.0  ;;  %v754_v13 = vld [vmem:[%s4421_s19 + $0x30] sm:$0xff]  ;;  %v766_v15 = vsel %vm756_vm0, %v753_v10, 0.0  ;;  %v755_v16 = vld [vmem:[%s4421_s19 + $0x38] sm:$0xff] }
  0x26   : > { %v768_v18 = vsel %vm756_vm0, %v754_v13, 0.0  ;;  %v770_v20 = vsel %vm756_vm0, %v755_v16, 0.0 }
  0x27   : > { %v761_v11 = vadd.f32 %v760_v6, %v759_v8  ;;  %v910_v54 = vld [vmem:[%s4422_s2] sm:$0x7]  ;;  %v903_v57 = vld [vmem:[%s4423_s23 + $0x8] sm:$0xff]  ;;  %v904_v58 = vld [vmem:[%s4423_s23 + $0x10] sm:$0xff] }
  0x28   : > { %v902_v55 = vld [vmem:[%s4423_s23] sm:$0xff]  ;;  %3183 = vmatprep.subr.msk.mxu1 %vm935_vm1, %v910_v54  ;;  %v905_v59 = vld [vmem:[%s4423_s23 + $0x18] sm:$0xff]  ;;  %v907_v61 = vld [vmem:[%s4423_s23 + $0x28] sm:$0xff] }
  0x29   : > { %v763_v14 = vadd.f32 %v762_v9, %v761_v11  ;;  %v901_v56 = vld [vmem:[%s4424_s10] sm:$0x7]  ;;  %3185 = vmatprep.mubr.msk.f32.mxu1 %vm756_vm0, %v902_v55  ;;  %3184 = vmatpush3.msk.msra.mxu1 %vm935_vm1, %v910_v54  ;;  %v908_v62 = vld [vmem:[%s4423_s23 + $0x30] sm:$0xff]  ;;  %v909_v63 = vld [vmem:[%s4423_s23 + $0x38] sm:$0xff] }
  0x2a   : > { %3197 = vmatprep.subr.msk.mxu0 %vm935_vm1, %v901_v56  ;;  %3186 = vmatmul.mubr.msk.f32.vlgmr.msra.gmra.mrb[0].mxu1 %vm756_vm0, %v903_v57  ;;  %v906_v60 = vld [vmem:[%s4423_s23 + $0x20] sm:$0xff] }
  0x2b   : > { %v765_v17 = vadd.f32 %v764_v12, %v763_v14  ;;  %3198 = vmatpush3.msk.msra.mxu0 %vm935_vm1, %v901_v56  ;;  %3188 = vmatprep.mubr.msk.f32.mxu1 %vm756_vm0, %v904_v58 }
  0x2d   : > { %v767_v19 = vadd.f32 %v766_v15, %v765_v17 }
  0x2e   : > { %3189 = vmatmul.mubr.msk.f32.gmra.mrb[2].mxu1 %vm756_vm0, %v905_v59 }
  0x2f   : > { %v769_v21 = vadd.f32 %v768_v18, %v767_v19  ;;  %3191 = vmatprep.mubr.msk.f32.mxu1 %vm756_vm0, %v906_v60 }
  0x31   : > { %v771_v22 = vadd.f32 %v770_v20, %v769_v21 }
  0x32   : > { %3192 = vmatmul.mubr.msk.f32.gmra.mrb[4].mxu1 %vm756_vm0, %v907_v61 }
  0x33   : > { %v772_v23 = vrot.slane %v771_v22, 4  ;;  %3194 = vmatprep.mubr.msk.f32.mxu1 %vm756_vm0, %v908_v62 }
  0x35   : > { %v773_v24 = vadd.f32 %v772_v23, %v771_v22 }
  0x36   : > { %3195 = vmatmul.mubr.msk.f32.gmra.mrb[6].mxu1 %vm756_vm0, %v909_v63 }
  0x37   : > { %v774_v25 = vrot.slane %v773_v24, 2 }
  0x39   : > { %v775_v26 = vadd.f32 %v774_v25, %v773_v24 }
  0x3b   : > { %v776_v27 = vrot.slane %v775_v26, 1 }
  0x3d   : > { %v777_v28 = vadd.f32 %v776_v27, %v775_v26 }
  0x3f   : > { %v779_v29 = vmul.f32 0.015625, %v777_v28 }
  0x41   : > { %v3787_v30 = vsub.f32 %v750_v2, %v779_v29  ;;  %v3789_v31 = vsub.f32 %v748_v0, %v779_v29  ;;  %v3791_v32 = vsub.f32 %v751_v3, %v779_v29  ;;  %v3793_v33 = vsub.f32 %v749_v1, %v779_v29 }
  0x42   : > { %v3795_v34 = vsub.f32 %v753_v10, %v779_v29  ;;  %v3797_v35 = vsub.f32 %v752_v7, %v779_v29  ;;  %v3809_v42 = vsub.f32 %v755_v16, %v779_v29  ;;  %v3811_v43 = vsub.f32 %v754_v13, %v779_v29 }
  0x43   : > { %v790_v36 = vmul.f32 %v3787_v30, %v3787_v30  ;;  %v788_v37 = vmul.f32 %v3789_v31, %v3789_v31  ;;  %v791_v38 = vmul.f32 %v3791_v32, %v3791_v32  ;;  %v789_v39 = vmul.f32 %v3793_v33, %v3793_v33 }
  0x44   : > { %v793_v46 = vmul.f32 %v3795_v34, %v3795_v34  ;;  %v792_v47 = vmul.f32 %v3797_v35, %v3797_v35  ;;  %v795_v50 = vmul.f32 %v3809_v42, %v3809_v42  ;;  %v794_v51 = vmul.f32 %v3811_v43, %v3811_v43 }
  0x45   : > { %v802_v40 = vsel %vm756_vm0, %v790_v36, 0.0  ;;  %v796_v41 = vsel %vm756_vm0, %v788_v37, 0.0  ;;  %v805_v44 = vsel %vm756_vm0, %v791_v38, 0.0  ;;  %v799_v45 = vsel %vm756_vm0, %v789_v39, 0.0 }
  0x46   : > { %803 = vadd.xlane.f32.xlu1 %v802_v40  ;;  %797 = vadd.xlane.f32.xlu0 %v796_v41  ;;  %v811_v48 = vsel %vm756_vm0, %v793_v46, 0.0  ;;  %v808_v49 = vsel %vm756_vm0, %v792_v47, 0.0  ;;  %v817_v52 = vsel %vm756_vm0, %v795_v50, 0.0  ;;  %v814_v53 = vsel %vm756_vm0, %v794_v51, 0.0 }
  0x4a   : > { %806 = vadd.xlane.f32.xlu1 %v805_v44  ;;  %800 = vadd.xlane.f32.xlu0 %v799_v45 }
  0x4e   : > { %812 = vadd.xlane.f32.xlu1 %v811_v48  ;;  %809 = vadd.xlane.f32.xlu0 %v808_v49 }
  0x52   : > { %818 = vadd.xlane.f32.xlu1 %v817_v52  ;;  %815 = vadd.xlane.f32.xlu0 %v814_v53 }
  0xd3   : > { %v3865_v0 = vpop.xlane.xlu1 %803  ;;  %v3867_v1 = vpop.xlane.xlu0 %797 }
  0xd4   : > { %3510 = vrsqrt.f32 %v3865_v0  ;;  %vm836_vm2 = vcmp.eq.f32.partialorder %v3865_v0, inf  ;;  %v839_v12 = vand.u32 2147483648, %v3865_v0  ;;  %vm822_vm3 = vcmp.eq.f32.partialorder %v3867_v1, inf }
  0xd5   : > { %3512 = vrsqrt.f32 %v3867_v1  ;;  %vm824_vm4 = vcmp.eq.f32.partialorder %v3867_v1, 0.0  ;;  %v825_v13 = vand.u32 2147483648, %v3867_v1  ;;  %vm838_vm9 = vcmp.eq.f32.partialorder %v3865_v0, 0.0 }
  0xd7   : > { %v3871_v2 = vpop.xlane.xlu1 %806  ;;  %v3873_v3 = vpop.xlane.xlu0 %800 }
  0xd8   : > { %3514 = vrsqrt.f32 %v3871_v2  ;;  %vm843_vm5 = vcmp.eq.f32.partialorder %v3871_v2, inf  ;;  %vm845_vm6 = vcmp.eq.f32.partialorder %v3871_v2, 0.0  ;;  %v846_v15 = vand.u32 2147483648, %v3871_v2 }
  0xd9   : > { %3516 = vrsqrt.f32 %v3873_v3  ;;  %vm829_vm7 = vcmp.eq.f32.partialorder %v3873_v3, inf  ;;  %vm831_vm8 = vcmp.eq.f32.partialorder %v3873_v3, 0.0  ;;  %v832_v20 = vand.u32 2147483648, %v3873_v3 }
  0xdb   : > { %v813_v4 = vpop.xlane.xlu1 %812  ;;  %v810_v5 = vpop.xlane.xlu0 %809 }
  0xdc   : > { %3518 = vrsqrt.f32 %v813_v4  ;;  %vm857_vm10 = vcmp.eq.f32.partialorder %v813_v4, inf  ;;  %vm859_vm11 = vcmp.eq.f32.partialorder %v813_v4, 0.0  ;;  %v860_v23 = vand.u32 2147483648, %v813_v4 }
  0xdd   : > { %3520 = vrsqrt.f32 %v810_v5  ;;  %vm850_vm12 = vcmp.eq.f32.partialorder %v810_v5, inf  ;;  %vm852_vm13 = vcmp.eq.f32.partialorder %v810_v5, 0.0  ;;  %v853_v25 = vand.u32 2147483648, %v810_v5 }
  0xde   : > { %v3511_v8 = vpop.eup %3510 }
  0xdf   : > { %v819_v6 = vpop.xlane.xlu1 %818  ;;  %v816_v7 = vpop.xlane.xlu0 %815  ;;  %v835_v14 = vmul.f32 %v3511_v8, %v3865_v0 }
  0xe0   : > { %3522 = vrsqrt.f32 %v819_v6  ;;  %v3513_v9 = vpop.eup %3512  ;;  %vm871_vm14 = vcmp.eq.f32.partialorder %v819_v6, inf  ;;  %vm873_vm15 = vcmp.eq.f32.partialorder %v819_v6, 0.0  ;;  %v874_v41 = vand.u32 2147483648, %v819_v6 }
  0xe1   : > { %3524 = vrsqrt.f32 %v816_v7  ;;  %v821_v17 = vmul.f32 %v3513_v9, %v3867_v1  ;;  %v837_v26 = vsel %vm836_vm2, %v3865_v0, %v835_v14  ;;  %vm864_vm1 = vcmp.eq.f32.partialorder %v816_v7, inf }
  0xe2   : > { %v3515_v10 = vpop.eup %3514  ;;  %vm866_vm2 = vcmp.eq.f32.partialorder %v816_v7, 0.0  ;;  %v867_v47 = vand.u32 2147483648, %v816_v7  ;;  %v840_v57 = vsel %vm838_vm9, %v839_v12, %v837_v26 }
  0xe3   : > { %v3517_v11 = vpop.eup %3516  ;;  %v842_v18 = vmul.f32 %v3515_v10, %v3871_v2  ;;  %v823_v29 = vsel %vm822_vm3, %v3867_v1, %v821_v17  ;;  %vm1191_vm3 = vcmask 261120  }
  0xe4   : > { %v828_v19 = vmul.f32 %v3517_v11, %v3873_v3  ;;  %v826_v49 = vsel %vm824_vm4, %v825_v13, %v823_v29 }
  0xe5   : > { %v844_v36 = vsel %vm843_vm5, %v3871_v2, %v842_v18 }
  0xe6   : > { %v3519_v16 = vpop.eup %3518  ;;  %v830_v37 = vsel %vm829_vm7, %v3873_v3, %v828_v19  ;;  %v847_v51 = vsel %vm845_vm6, %v846_v15, %v844_v36 }
  0xe7   : > { %v3521_v21 = vpop.eup %3520  ;;  %v856_v22 = vmul.f32 %v3519_v16, %v813_v4  ;;  %v833_v50 = vsel %vm831_vm8, %v832_v20, %v830_v37 }
  0xe8   : > { %v849_v24 = vmul.f32 %v3521_v21, %v810_v5 }
  0xe9   : > { %v858_v27 = vsel %vm857_vm10, %v813_v4, %v856_v22 }
  0xea   : > { %v3523_v28 = vpop.eup %3522  ;;  %v851_v38 = vsel %vm850_vm12, %v810_v5, %v849_v24  ;;  %v861_v45 = vsel %vm859_vm11, %v860_v23, %v858_v27 }
  0xeb   : > { %v3525_v39 = vpop.eup %3524  ;;  %v870_v40 = vmul.f32 %v3523_v28, %v819_v6  ;;  %v854_v44 = vsel %vm852_vm13, %v853_v25, %v851_v38  ;;  %v877_v55 = vmax.f32 %v833_v50, %v861_v45 }
  0xec   : > { %v863_v46 = vmul.f32 %v3525_v39, %v816_v7  ;;  %v876_v54 = vmax.f32 %v826_v49, %v854_v44 }
  0xed   : > { %v872_v48 = vsel %vm871_vm14, %v819_v6, %v870_v40 }
  0xee   : > { %v875_v52 = vsel %vm873_vm15, %v874_v41, %v872_v48  ;;  %v865_v53 = vsel %vm864_vm1, %v816_v7, %v863_v46  ;;  %v880_v60 = vmax.f32 %v876_v54, %v877_v55 }
  0xef   : > { %v868_v56 = vsel %vm866_vm2, %v867_v47, %v865_v53  ;;  %v879_v58 = vmax.f32 %v847_v51, %v875_v52 }
  0xf0   : > { %v878_v59 = vmax.f32 %v840_v57, %v868_v56 }
  0xf2   : > { %v881_v61 = vmax.f32 %v878_v59, %v879_v58 }
  0xf4   : > { %v882_v62 = vmax.f32 %v880_v60, %v881_v61 }
  0xf6   : > { %v883_v63 = vrot.slane %v882_v62, 4 }
  0xf8   : > { %v884_v1 = vmax.f32 %v882_v62, %v883_v63 }
  0xfa   : > { %v885_v3 = vrot.slane %v884_v1, 2 }
  0xfc   : > { %v886_v4 = vmax.f32 %v884_v1, %v885_v3 }
  0xfd   : > { %v3187_v12 = vpop.f32.mrb[0].mxu1 }
  0xfe   : > { %v887_v2 = vrot.slane %v886_v4, 1 }
 0x100   : > { %v888_v5 = vmax.f32 %v886_v4, %v887_v2 }
 0x102   : > { %3496 = vpush %v888_v5 }
 0x133   : > { %s3497_s2 = spop %3496 }
 0x134   : > { %s890_s0 = smax.f32 %s3590_s29, %s3497_s2 }
 0x135   : > { %v891_v6 = vstv %s890_s0 }
 0x136   : > { %3526 = vrcp.f32 %v891_v6 }
 0x140   : > { %v3527_v7 = vpop.eup %3526 }
 0x141   : > { %v893_v0 = vmul.f32 %v3527_v7, %v3789_v31  ;;  %v894_v8 = vmul.f32 %v3527_v7, %v3793_v33  ;;  %v895_v9 = vmul.f32 %v3527_v7, %v3787_v30  ;;  %v896_v10 = vmul.f32 %v3527_v7, %v3791_v32  ;;  %v1005_v32 = vpop.f32.mrb[1].mxu1 }
 0x142   : > { %v897_v11 = vmul.f32 %v3527_v7, %v3797_v35  ;;  %v898_v31 = vmul.f32 %v3527_v7, %v3795_v34  ;;  %v899_v33 = vmul.f32 %v3527_v7, %v3811_v43  ;;  %v900_v30 = vmul.f32 %v3527_v7, %v3809_v42  ;;  %v3190_v13 = vpop.f32.mrb[2].mxu1  ;;  %v2945_v34 = vld [vmem:[%s4384_s4] ss:$0 sm:$0xff] }
 0x143   : > { %3199 = vmatprep.mubr.msk.f32.mxu0 %vm756_vm0, %v893_v0  ;;  %v1015_v35 = vpop.f32.mrb[3].mxu1 }
 0x144   : > { %3200 = vmatmul.mubr.msk.f32.vlgmr.msra.gmra.mrb[0].mxu0 %vm756_vm0, %v894_v8  ;;  %v3193_v14 = vpop.f32.mrb[4].mxu1 }
 0x145   : > { %3202 = vmatprep.mubr.msk.f32.mxu0 %vm756_vm0, %v895_v9  ;;  %v1025_v15 = vpop.f32.mrb[5].mxu1 }
 0x146   : > { %v3196_v16 = vpop.f32.mrb[6].mxu1 }
 0x147   : > { %v1035_v17 = vpop.f32.mrb[7].mxu1 }
 0x148   : > { %3203 = vmatmul.mubr.msk.f32.gmra.mrb[2].mxu0 %vm756_vm0, %v896_v10 }
 0x149   : > { %3205 = vmatprep.mubr.msk.f32.mxu0 %vm756_vm0, %v897_v11 }
 0x14c   : > { %3206 = vmatmul.mubr.msk.f32.gmra.mrb[4].mxu0 %vm756_vm0, %v898_v31 }
 0x14d   : > { %3208 = vmatprep.mubr.msk.f32.mxu0 %vm756_vm0, %v899_v33 }
 0x150   : > { %3209 = vmatmul.mubr.msk.f32.gmra.mrb[6].mxu0 %vm756_vm0, %v900_v30 }
 0x217   : > { %v3201_v18 = vpop.f32.mrb[0].mxu0 }
 0x218   : > { %v1143_v43 = vadd.f32 %v3201_v18, %v3187_v12  ;;  %v1137_v19 = vpop.f32.mrb[1].mxu0 }
 0x219   : > { %v1138_v20 = vadd.f32 %v1137_v19, %v1005_v32 }
 0x21a   : > { %v1184_v42 = vadd.f32 %v2945_v34, %v1143_v43 }
 0x21b   : > { %v1183_v21 = vadd.f32 %v2945_v34, %v1138_v20  ;;  %v3204_v22 = vpop.f32.mrb[2].mxu0 }
 0x21c   : > { %1193 = vst.msk [vmem:[#allocation2 + $0x8] sm:$0xff] %vm1191_vm3, %v1184_v42  ;;  %v1153_v23 = vadd.f32 %v3204_v22, %v3190_v13  ;;  %v1147_v24 = vpop.f32.mrb[3].mxu0 }
 0x21d   : > { %1192 = vst.msk [vmem:[#allocation2] sm:$0xff] %vm1191_vm3, %v1183_v21  ;;  %v1148_v25 = vadd.f32 %v1147_v24, %v1015_v35 }
 0x21e   : > { %v1186_v26 = vadd.f32 %v2945_v34, %v1153_v23 }
 0x21f   : > { %v1185_v27 = vadd.f32 %v2945_v34, %v1148_v25  ;;  %v3207_v28 = vpop.f32.mrb[4].mxu0 }
 0x220   : > { %1195 = vst.msk [vmem:[#allocation2 + $0x18] sm:$0xff] %vm1191_vm3, %v1186_v26  ;;  %v1163_v29 = vadd.f32 %v3207_v28, %v3193_v14  ;;  %v1157_v36 = vpop.f32.mrb[5].mxu0 }
 0x221   : > { %1194 = vst.msk [vmem:[#allocation2 + $0x10] sm:$0xff] %vm1191_vm3, %v1185_v27  ;;  %v1158_v37 = vadd.f32 %v1157_v36, %v1025_v15 }
 0x222   : > { %v1188_v38 = vadd.f32 %v2945_v34, %v1163_v29 }
 0x223   : > { %v1187_v39 = vadd.f32 %v2945_v34, %v1158_v37  ;;  %v3210_v40 = vpop.f32.mrb[6].mxu0 }
 0x224   : > { %1197 = vst.msk [vmem:[#allocation2 + $0x28] sm:$0xff] %vm1191_vm3, %v1188_v38  ;;  %v1173_v41 = vadd.f32 %v3210_v40, %v3196_v16  ;;  %v1167_v44 = vpop.f32.mrb[7].mxu0 }
 0x225   : > { %1196 = vst.msk [vmem:[#allocation2 + $0x20] sm:$0xff] %vm1191_vm3, %v1187_v39  ;;  %v1168_v45 = vadd.f32 %v1167_v44, %v1035_v17 }
 0x226   : > { %v1190_v46 = vadd.f32 %v2945_v34, %v1173_v41 }
 0x227   : > { %v1189_v47 = vadd.f32 %v2945_v34, %v1168_v45 }
 0x228   : > { %1199 = vst.msk [vmem:[#allocation2 + $0x38] sm:$0xff] %vm1191_vm3, %v1190_v46 }
 0x229   : > { %1198 = vst.msk [vmem:[#allocation2 + $0x30] sm:$0xff] %vm1191_vm3, %v1189_v47 }
 0x22a PF: > { %v1208_v48 = vld [vmem:[%s4385_s5] sm:$0xff]  ;;  %v1209_v49 = vld [vmem:[%s4385_s5 + $0x8] sm:$0xff]  ;;  %v3953_v52 = vld [vmem:[#allocation2 + $0x10] sm:$0xff]  ;;  %v3591_v61 = vmov 0   ;;  %vm1248_vm0 = vcmask 523264   ;;  %vm1384_vm4 = vcmask 130048   ;;  %v1347_v33 = vlaneseq  ;;  %s4425_s29 = scalar_lea.vmem %s4389_s9, %s3705_s20  ;;  %s4427_s8 = scalar_lea.vmem %s4394_s14, %s3705_s20 }
 0x22b   : > { %1216 = vxpose.xlu0.b32.start [1/8] (short) (narrow) %v1208_v48, 16  ;;  %v3949_v50 = vld [vmem:[#allocation2] sm:$0xff]  ;;  %v3951_v51 = vld [vmem:[#allocation2 + $0x8] sm:$0xff]  ;;  %v3955_v53 = vld [vmem:[#allocation2 + $0x18] sm:$0xff]  ;;  %3528 = vset.pattern.permute.xlu1 %v3591_v61  ;;  %vm1646_vm5 = vcmask 261120   ;;  %s3592_s0 = smov 96  }
 0x22c   : > { %v3402_v54 = vpack.c.bf16 %v3951_v51, %v3949_v50  ;;  %v3406_v55 = vpack.c.bf16 %v3955_v53, %v3953_v52  ;;  %v3961_v56 = vld [vmem:[#allocation2 + $0x20] sm:$0xff]  ;;  %v3963_v57 = vld [vmem:[#allocation2 + $0x28] sm:$0xff]  ;;  %v1210_v58 = vld [vmem:[%s4385_s5 + $0x10] sm:$0xff]  ;;  %v1348_v30 = vshrl.u32 %v1347_v33, 7  ;;  %p3031_p5 = scmp.ne.s32.totalorder %s3699_s30, 3 }
 0x22d   : > { %v1330_v59 = vld [vmem:[%s4387_s7] sm:$0xff]  ;;  %v1331_v60 = vld [vmem:[%s4387_s7 + $0x8] sm:$0xff]  ;;  %v3410_v63 = vpack.c.bf16 %v3963_v57, %v3961_v56  ;;  %v1211_v2 = vld [vmem:[%s4385_s5 + $0x18] sm:$0xff]  ;;  %s4428_s24 = sld [smem:[#allocation9_spill]] (!%p3031_p5)  ;;  %vm2777_vm6 = vcmask (!%p3031_p5), 7168   ;;  %s4429_s26 = sld [smem:[#allocation14_spill]] (!%p3031_p5) }
 0x22e   : > { %3403 = vmatprep.subr.bf16.mxu0 %v3402_v54  ;;  %v1332_v62 = vsub.f32 0.0, %v1330_v59  ;;  %v1333_v4 = vsub.f32 0.0, %v1331_v60  ;;  %v1212_v6 = vld [vmem:[%s4385_s5 + $0x20] sm:$0xff]  ;;  %v1213_v7 = vld [vmem:[%s4385_s5 + $0x28] sm:$0xff]  ;;  %v1214_v0 = vld [vmem:[%s4385_s5 + $0x30] sm:$0xff]  ;;  %v1349_v35 = vsub.s32 0, %v1348_v30 }
 0x22f   : > { %1217 = vxpose.xlu0.b32.cont [2/8] (short) (narrow) %v1209_v49, 16  ;;  %3405 = vmatpush3.bf16.msra.mxu0 %v3402_v54  ;;  %v3978_v3 = vld [vmem:[#allocation2 + $0x38] sm:$0xff]  ;;  %v1360_v11 = vld [vmem:[%s4386_s6] sm:$0xff]  ;;  %v1957_v23 = vld [vmem:[%s3725_s21 + $0x8] sm:$0xff] }
 0x230   : > { %3407 = vmatprep.subr.bf16.mxu0 %v3406_v55  ;;  %v3976_v1 = vld [vmem:[#allocation2 + $0x30] sm:$0xff]  ;;  %1338 = vperm.xlu1 %3528, %v1332_v62   ;;  %v1215_v8 = vld [vmem:[%s4385_s5 + $0x38] sm:$0xff]  ;;  %v1364_v31 = vld [vmem:[%s4386_s6 + $0x20] sm:$0xff] }
 0x231   : > { %v3414_v5 = vpack.c.bf16 %v3978_v3, %v3976_v1  ;;  %3240 = vmatprep.mubr.msk.f32.mxu1 %vm1384_vm4, %v1364_v31  ;;  %v1334_v12 = vld [vmem:[%s4425_s29] sm:$0x1]  ;;  %v1958_v27 = vld [vmem:[%s3725_s21 + $0x10] sm:$0xff]  ;;  %v1959_v28 = vld [vmem:[%s3725_s21 + $0x18] sm:$0xff] }
 0x232   : > { %v1335_v13 = vand.u32 2147483647, %v1334_v12  ;;  %v1956_v22 = vld [vmem:[%s3725_s21] sm:$0xff]  ;;  %v1361_v29 = vld [vmem:[%s4386_s6 + $0x8] sm:$0xff]  ;;  %v1362_v37 = vld [vmem:[%s4386_s6 + $0x10] sm:$0xff]  ;;  %v3434_v39 = vpack.c.bf16 %v1959_v28, %v1958_v27 }
 0x233   : > { %1218 = vxpose.xlu0.b32.cont [3/8] (short) (narrow) %v1210_v58, 16  ;;  %3409 = vmatpush3.bf16.msra.mxu0 %v3406_v55  ;;  %v3430_v26 = vpack.c.bf16 %v1957_v23, %v1956_v22  ;;  %v1365_v36 = vld [vmem:[%s4386_s6 + $0x28] sm:$0xff]  ;;  %v1366_v38 = vld [vmem:[%s4386_s6 + $0x30] sm:$0xff]  ;;  %v1363_v40 = vld [vmem:[%s4386_s6 + $0x18] sm:$0xff] }
 0x234   : > { %3411 = vmatprep.subr.bf16.mxu0 %v3410_v63  ;;  %1343 = vperm.xlu1 %3528, %v1333_v4   ;;  %v1350_v14 = vrot.slane %v1335_v13, %v1349_v35  ;;  %v1367_v41 = vld [vmem:[%s4386_s6 + $0x38] sm:$0xff]  ;;  %v1368_v44 = vld [vmem:[%s4386_s6 + $0x40] sm:$0xff]  ;;  %v1369_v45 = vld [vmem:[%s4386_s6 + $0x48] sm:$0xff] }
 0x235   : > { %v1370_v46 = vld [vmem:[%s4386_s6 + $0x50] sm:$0xff]  ;;  %v1371_v47 = vld [vmem:[%s4386_s6 + $0x58] sm:$0xff]  ;;  %v1372_v48 = vld [vmem:[%s4386_s6 + $0x60] sm:$0xff] }
 0x236   : > { %v1373_v49 = vld [vmem:[%s4386_s6 + $0x68] sm:$0xff]  ;;  %v1374_v54 = vld [vmem:[%s4386_s6 + $0x70] sm:$0xff]  ;;  %v1375_v55 = vld [vmem:[%s4386_s6 + $0x78] sm:$0xff] }
 0x237   : > { %1219 = vxpose.xlu0.b32.cont [4/8] (short) (narrow) %v1211_v2, 16  ;;  %3413 = vmatpush3.bf16.msra.mxu0 %v3410_v63  ;;  %v1376_v58 = vld [vmem:[%s4386_s6 + $0x80] sm:$0xff]  ;;  %v1377_v59 = vld [vmem:[%s4386_s6 + $0x88] sm:$0xff]  ;;  %v1378_v60 = vld [vmem:[%s4386_s6 + $0x90] sm:$0xff] }
 0x238   : > { %3415 = vmatprep.subr.bf16.mxu0 %v3414_v5  ;;  %v1380_v62 = vld [vmem:[%s4386_s6 + $0xa0] sm:$0xff]  ;;  %v1381_v63 = vld [vmem:[%s4386_s6 + $0xa8] sm:$0xff]  ;;  %v1382_v4 = vld [vmem:[%s4386_s6 + $0xb0] sm:$0xff] }
 0x239   : > { %v1383_v2 = vld [vmem:[%s4386_s6 + $0xb8] sm:$0xff] }
 0x23b   : > { %1220 = vxpose.xlu0.b32.cont [5/8] (short) (narrow) %v1212_v6, 16  ;;  %3417 = vmatpush3.bf16.msra.mxu0 %v3414_v5  ;;  %v1642_v5 = vld [vmem:[%s3715_s25] sm:$0xff]  ;;  %v1643_v6 = vld [vmem:[%s3715_s25 + $0x8] sm:$0xff] }
 0x23f   : > { %1221 = vxpose.xlu0.b32.cont [6/8] (short) (narrow) %v1213_v7, 16  ;;  %v3422_v7 = vpack.c.bf16 %v1643_v6, %v1642_v5 }
 0x243   : > { %1222 = vxpose.xlu0.b32.cont [7/8] (short) (narrow) %v1214_v0, 16  ;;  %v1644_v0 = vld [vmem:[%s3715_s25 + $0x10] sm:$0xff] }
 0x247   : > { %1223 = vxpose.xlu0.b32.end [8/8] (short) (narrow) %v1215_v8, 16  ;;  %v1645_v8 = vld [vmem:[%s3715_s25 + $0x18] sm:$0xff]  ;;  %s4426_s25 = sld [smem:[#allocation4_spill]] }
 0x24d   : > { %v1953_v27 = vld [vmem:[%s4426_s25 + $0x8] sm:$0xff] }
 0x270   : > { %3529 = vset.pattern.permute.xlu0 %v3591_v61  ;;  %v1379_v61 = vld [vmem:[%s4386_s6 + $0x98] sm:$0xff] }
 0x2ab   : > { %v1232_v9 = vpop.trf.xlu0 }
 0x2ac   : > { %3227 = vmatprep.mubr.msk.f32.mxu0 %vm1248_vm0, %v1232_v9  ;;  %v3426_v9 = vpack.c.bf16 %v1645_v8, %v1644_v0  ;;  %v2383_v0 = vld [vmem:[%s3739_s3 + $0x8] sm:$0xff] }
 0x2af   : > { %v1233_v10 = vpop.trf.xlu0  ;;  %v1339_v32 = vpop.permute.xlu1 %1338 }
 0x2b0   : > { %3228 = vmatmul.mubr.msk.f32.vlgmr.msra.gmra.mrb[0].mxu0 %vm1248_vm0, %v1233_v10  ;;  %v1352_v17 = vmul.f32 %v1350_v14, %v1339_v32 }
 0x2b1   : > { %3234 = vmatprep.mubr.msk.f32.mxu0 %vm1384_vm4, %v1360_v11 }
 0x2b2   : > { %v1354_v34 = vmul.f32 1.442695, %v1352_v17 }
 0x2b3   : > { %v1344_v15 = vpop.permute.xlu1 %1343 }
 0x2b4   : > { %v1353_v16 = vmul.f32 %v1350_v14, %v1344_v15 }
 0x2b6   : > { %v1356_v18 = vmul.f32 1.442695, %v1353_v16 }
 0x2b8   : > { %3530 = vpow2.f32 %v1356_v18 }
 0x2b9   : > { %3532 = vpow2.f32 %v1354_v34 }
 0x2c2   : > { %v3531_v43 = vpop.eup %3530 }
 0x2c3   : > { %v3533_v20 = vpop.eup %3532 }
 0x383   : > { %v3229_v19 = vpop.f32.mrb[0].mxu0 }
 0x384   : > { %v1359_v42 = vmul.f32 %v3531_v43, %v3229_v19  ;;  %v1321_v21 = vpop.f32.mrb[1].mxu0 }
 0x385   : > { %v1358_v24 = vmul.f32 %v3533_v20, %v1321_v21 }
 0x387   : > { %v3418_v25 = vpack.c.bf16 %v1359_v42, %v1358_v24 }
 0x389   : > { %3419 = vmatprep.subr.bf16.mxu0 %v3418_v25  ;;  %3478 = vmatprep.subr.bf16.mxu1 %v3418_v25 }
 0x38a   : > { %3421 = vmatpush3.bf16.msra.mxu0 %v3418_v25  ;;  %3479 = vmatpush3.bf16.msra.mxu1 %v3418_v25 }
 0x38b   : > { %3431 = vmatprep.subr.bf16.mxu1 %v3430_v26  ;;  %3423 = vmatprep.subr.bf16.mxu0 %v3422_v7 }
 0x38d   : > { %3235 = vmatmul.mubr.msk.f32.vlgmr.msra.gmra.mrb[2].mxu0 %vm1384_vm4, %v1361_v29  ;;  %3241 = vmatmul.mubr.msk.f32.vlgmr.msra.gmra.mrb[0].mxu1 %vm1384_vm4, %v1365_v36 }
 0x38e   : > { %3237 = vmatprep.mubr.msk.f32.mxu0 %vm1384_vm4, %v1362_v37  ;;  %3243 = vmatprep.mubr.msk.f32.mxu1 %vm1384_vm4, %v1366_v38  ;;  %v1954_v37 = vld [vmem:[%s4426_s25 + $0x10] sm:$0xff]  ;;  %v1955_v38 = vld [vmem:[%s4426_s25 + $0x18] sm:$0xff] }
 0x38f   : > { %3433 = vmatpush3.bf16.msra.mxu1 %v3430_v26  ;;  %3425 = vmatpush3.bf16.msra.mxu0 %v3422_v7  ;;  %v1952_v26 = vld [vmem:[%s4426_s25] sm:$0xff] }
 0x390   : > { %3435 = vmatprep.subr.bf16.mxu1 %v3434_v39  ;;  %3427 = vmatprep.subr.bf16.mxu0 %v3426_v9  ;;  %v3438_v28 = vpack.c.bf16 %v1953_v27, %v1952_v26  ;;  %v2382_v7 = vld [vmem:[%s3739_s3] sm:$0xff] }
 0x391   : > { %3238 = vmatmul.mubr.msk.f32.gmra.mrb[4].mxu0 %vm1384_vm4, %v1363_v40  ;;  %3244 = vmatmul.mubr.msk.f32.gmra.mrb[2].mxu1 %vm1384_vm4, %v1367_v41  ;;  %v3442_v40 = vpack.c.bf16 %v1955_v38, %v1954_v37  ;;  %v3454_v8 = vpack.c.bf16 %v2383_v0, %v2382_v7 }
 0x392   : > { %3246 = vmatprep.mubr.msk.f32.mxu1 %vm1384_vm4, %v1368_v44 }
 0x393   : > { %3437 = vmatpush3.bf16.msra.mxu1 %v3434_v39  ;;  %3429 = vmatpush3.bf16.msra.mxu0 %v3426_v9 }
 0x394   : > { %3439 = vmatprep.subr.bf16.mxu1 %v3438_v28  ;;  %3455 = vmatprep.subr.bf16.mxu0 %v3454_v8 }
 0x395   : > { %3247 = vmatmul.mubr.msk.f32.gmra.mrb[4].mxu1 %vm1384_vm4, %v1369_v45 }
 0x396   : > { %3249 = vmatprep.mubr.msk.f32.mxu1 %vm1384_vm4, %v1370_v46 }
 0x399   : > { %3250 = vmatmul.mubr.msk.f32.gmra.mrb[6].mxu1 %vm1384_vm4, %v1371_v47 }
 0x39a   : > { %3252 = vmatprep.mubr.msk.f32.mxu1 %vm1384_vm4, %v1372_v48  ;;  %v2218_v48 = vld [vmem:[%s3730_s22] sm:$0xff] }
 0x39d   : > { %3253 = vmatmul.mubr.msk.f32.gmra.mrb[8].mxu1 %vm1384_vm4, %v1373_v49  ;;  %v2219_v49 = vld [vmem:[%s3730_s22 + $0x8] sm:$0xff] }
 0x39e   : > { %3255 = vmatprep.mubr.msk.f32.mxu1 %vm1384_vm4, %v1374_v54 }
 0x3a1   : > { %3256 = vmatmul.mubr.msk.f32.gmra.mrb[10].mxu1 %vm1384_vm4, %v1375_v55  ;;  %v3446_v55 = vpack.c.bf16 %v2219_v49, %v2218_v48 }
 0x3a2   : > { %3258 = vmatprep.mubr.msk.f32.mxu1 %vm1384_vm4, %v1376_v58 }
 0x3a5   : > { %3259 = vmatmul.mubr.msk.f32.gmra.mrb[12].mxu1 %vm1384_vm4, %v1377_v59  ;;  %v2220_v59 = vld [vmem:[%s3730_s22 + $0x10] sm:$0xff] }
 0x3a6   : > { %3261 = vmatprep.mubr.msk.f32.mxu1 %vm1384_vm4, %v1378_v60  ;;  %v2221_v60 = vld [vmem:[%s3730_s22 + $0x18] sm:$0xff] }
 0x3a9   : > { %3262 = vmatmul.mubr.msk.f32.gmra.mrb[14].mxu1 %vm1384_vm4, %v1379_v61 }
 0x3aa   : > { %3264 = vmatprep.mubr.msk.f32.mxu1 %vm1384_vm4, %v1380_v62  ;;  %v3450_v62 = vpack.c.bf16 %v2221_v60, %v2220_v59 }
 0x3ad   : > { %3265 = vmatmul.mubr.msk.f32.gmra.mrb[16].mxu1 %vm1384_vm4, %v1381_v63 }
 0x3ae   : > { %3267 = vmatprep.mubr.msk.f32.mxu1 %vm1384_vm4, %v1382_v4 }
 0x3b1   : > { %3268 = vmatmul.mubr.msk.f32.gmra.mrb[18].mxu1 %vm1384_vm4, %v1383_v2 }
 0x460   : > { %v3236_v10 = vpop.f32.mrb[2].mxu0  ;;  %v3242_v11 = vpop.f32.mrb[0].mxu1 }
 0x461   : > { %v1523_v31 = vpop.f32.mrb[3].mxu0  ;;  %v1543_v33 = vpop.f32.mrb[1].mxu1 }
 0x462   : > { %3310 = vmatprep.mubr.msk.f32.mxu1 %vm1646_vm5, %v1523_v31 }
 0x463   : > { %3311 = vmatmul.mubr.msk.f32.vlgmr.msra.gmra.mrb[20].mxu1 %vm1646_vm5, %v3236_v10 }
 0x464   : > { %v3239_v30 = vpop.f32.mrb[4].mxu0  ;;  %v3245_v12 = vpop.f32.mrb[2].mxu1  ;;  %3441 = vmatpush3.bf16.msra.mxu1 %v3438_v28 }
 0x465   : > { %v1533_v32 = vpop.f32.mrb[5].mxu0  ;;  %v1553_v13 = vpop.f32.mrb[3].mxu1  ;;  %3443 = vmatprep.subr.bf16.mxu1 %v3442_v40 }
 0x466   : > { %3313 = vmatprep.mubr.msk.f32.mxu1 %vm1646_vm5, %v1533_v32 }
 0x467   : > { %3314 = vmatmul.mubr.msk.f32.gmra.mrb[22].mxu1 %vm1646_vm5, %v3239_v30 }
 0x468   : > { %v4110_v35 = vpop.f32.mrb[4].mxu1  ;;  %3316 = vmatprep.mubr.msk.f32.mxu1 %vm1646_vm5, %v1543_v33  ;;  %3445 = vmatpush3.bf16.msra.mxu1 %v3442_v40 }
 0x469   : > { %v4113_v14 = vpop.f32.mrb[5].mxu1  ;;  %3447 = vmatprep.subr.bf16.mxu1 %v3446_v55 }
 0x46a   : > { %3278 = vmatprep.mubr.msk.f32.mxu0 %vm1646_vm5, %v4113_v14 }
 0x46b   : > { %3279 = vmatmul.mubr.msk.f32.vlgmr.msra.gmra.mrb[6].mxu0 %vm1646_vm5, %v4110_v35  ;;  %3317 = vmatmul.mubr.msk.f32.gmra.mrb[24].mxu1 %vm1646_vm5, %v3242_v11 }
 0x46c   : > { %v4120_v15 = vpop.f32.mrb[6].mxu1  ;;  %3319 = vmatprep.mubr.msk.f32.mxu1 %vm1646_vm5, %v1553_v13  ;;  %3457 = vmatpush3.bf16.msra.mxu0 %v3454_v8 }
 0x46d   : > { %v4123_v16 = vpop.f32.mrb[7].mxu1 }
 0x46e   : > { %3281 = vmatprep.mubr.msk.f32.mxu0 %vm1646_vm5, %v4123_v16 }
 0x46f   : > { %3282 = vmatmul.mubr.msk.f32.gmra.mrb[8].mxu0 %vm1646_vm5, %v4120_v15  ;;  %3320 = vmatmul.mubr.msk.f32.gmra.mrb[26].mxu1 %vm1646_vm5, %v3245_v12 }
 0x470   : > { %v4130_v17 = vpop.f32.mrb[8].mxu1  ;;  %3330 = vmatprep.mubr.msk.f32.mxu1 %vm1646_vm5, %v3949_v50 }
 0x471   : > { %v4134_v18 = vpop.f32.mrb[9].mxu1 }
 0x472   : > { %3284 = vmatprep.mubr.msk.f32.mxu0 %vm1646_vm5, %v4134_v18 }
 0x473   : > { %3285 = vmatmul.mubr.msk.f32.gmra.mrb[10].mxu0 %vm1646_vm5, %v4130_v17  ;;  %3331 = vmatmul.mubr.msk.f32.vlgmr.msra.gmra.mrb[20].mxu1 %vm1646_vm5, %v3951_v51 }
 0x474   : > { %v4140_v34 = vpop.f32.mrb[10].mxu1  ;;  %3333 = vmatprep.mubr.msk.f32.mxu1 %vm1646_vm5, %v3953_v52  ;;  %3449 = vmatpush3.bf16.msra.mxu1 %v3446_v55 }
 0x475   : > { %v4142_v43 = vpop.f32.mrb[11].mxu1  ;;  %3451 = vmatprep.subr.bf16.mxu1 %v3450_v62 }
 0x476   : > { %3287 = vmatprep.mubr.msk.f32.mxu0 %vm1646_vm5, %v4142_v43 }
 0x477   : > { %3288 = vmatmul.mubr.msk.f32.gmra.mrb[12].mxu0 %vm1646_vm5, %v4140_v34  ;;  %3334 = vmatmul.mubr.msk.f32.gmra.mrb[22].mxu1 %vm1646_vm5, %v3955_v53 }
 0x478   : > { %v4148_v19 = vpop.f32.mrb[12].mxu1  ;;  %3336 = vmatprep.mubr.msk.f32.mxu1 %vm1646_vm5, %v3961_v56  ;;  %3453 = vmatpush3.bf16.msra.mxu1 %v3450_v62 }
 0x479   : > { %v4150_v20 = vpop.f32.mrb[13].mxu1 }
 0x47a   : > { %3290 = vmatprep.mubr.msk.f32.mxu0 %vm1646_vm5, %v4150_v20 }
 0x47b   : > { %3291 = vmatmul.mubr.msk.f32.gmra.mrb[14].mxu0 %vm1646_vm5, %v4148_v19  ;;  %3337 = vmatmul.mubr.msk.f32.gmra.mrb[24].mxu1 %vm1646_vm5, %v3963_v57 }
 0x47c   : > { %v4156_v42 = vpop.f32.mrb[14].mxu1  ;;  %3339 = vmatprep.mubr.msk.f32.mxu1 %vm1646_vm5, %v3976_v1 }
 0x47d   : > { %v4158_v21 = vpop.f32.mrb[15].mxu1 }
 0x47e   : > { %3293 = vmatprep.mubr.msk.f32.mxu0 %vm1646_vm5, %v4158_v21 }
 0x47f   : > { %3294 = vmatmul.mubr.msk.f32.gmra.mrb[16].mxu0 %vm1646_vm5, %v4156_v42  ;;  %3340 = vmatmul.mubr.msk.f32.gmra.mrb[26].mxu1 %vm1646_vm5, %v3978_v3 }
 0x480   : > { %v4164_v22 = vpop.f32.mrb[16].mxu1 }
 0x481   : > { %v4166_v23 = vpop.f32.mrb[17].mxu1 }
 0x482   : > { %3296 = vmatprep.mubr.msk.f32.mxu0 %vm1646_vm5, %v4166_v23 }
 0x483   : > { %3297 = vmatmul.mubr.msk.f32.gmra.mrb[18].mxu0 %vm1646_vm5, %v4164_v22 }
 0x484   : > { %v4172_v24 = vpop.f32.mrb[18].mxu1 }
 0x485   : > { %v4174_v25 = vpop.f32.mrb[19].mxu1 }
 0x486   : > { %3299 = vmatprep.mubr.msk.f32.mxu0 %vm1646_vm5, %v4174_v25 }
 0x487   : > { %3300 = vmatmul.mubr.msk.f32.gmra.mrb[20].mxu0 %vm1646_vm5, %v4172_v24 }
 0x53e   : > { %v4182_v29 = vpop.f32.mrb[6].mxu0 }
 0x53f   : > { %1890 = vrot.lane.b32.xlu1 %v4182_v29, %s3592_s0  ;;  %v4186_v36 = vpop.f32.mrb[7].mxu0 }
 0x542   : > { %v4190_v39 = vpop.f32.mrb[8].mxu0 }
 0x543   : > { %1888 = vrot.lane.b32.xlu1 %v4186_v36, %s3592_s0  ;;  %v4194_v41 = vpop.f32.mrb[9].mxu0 }
 0x546   : > { %v4196_v44 = vpop.f32.mrb[10].mxu0 }
 0x547   : > { %1892 = vrot.lane.b32.xlu1 %v4194_v41, %s3592_s0  ;;  %v4200_v45 = vpop.f32.mrb[11].mxu0 }
 0x54a   : > { %v4206_v46 = vpop.f32.mrb[12].mxu0 }
 0x54b   : > { %v4208_v47 = vpop.f32.mrb[13].mxu0 }
 0x54e   : > { %v3292_v54 = vpop.f32.mrb[14].mxu0 }
 0x54f   : > { %1850 = vrot.lane.b32.xlu1 %v3292_v54, %s3592_s0  ;;  %v1801_v58 = vpop.f32.mrb[15].mxu0 }
 0x552   : > { %v3295_v61 = vpop.f32.mrb[16].mxu0 }
 0x553   : > { %1848 = vrot.lane.b32.xlu1 %v1801_v58, %s3592_s0  ;;  %1854 = vrot.lane.b32.xlu0 %v3295_v61, %s3592_s0  ;;  %v1811_v63 = vpop.f32.mrb[17].mxu0 }
 0x556   : > { %v3298_v4 = vpop.f32.mrb[18].mxu0 }
 0x557   : > { %1894 = vrot.lane.b32.xlu1 %v4190_v39, %s3592_s0  ;;  %v1821_v2 = vpop.f32.mrb[19].mxu0 }
 0x55a   : > { %v4229_v5 = vpop.f32.mrb[20].mxu0 }
 0x55b   : > { %1896 = vrot.lane.b32.xlu1 %v4200_v45, %s3592_s0  ;;  %v1831_v6 = vpop.f32.mrb[21].mxu0 }
 0x55f   : > { %1898 = vrot.lane.b32.xlu1 %v4196_v44, %s3592_s0 }
 0x563   : > { %1900 = vrot.lane.b32.xlu1 %v4208_v47, %s3592_s0 }
 0x567   : > { %1852 = vrot.lane.b32.xlu1 %v1811_v63, %s3592_s0 }
 0x56b   : > { %1858 = vrot.lane.b32.xlu1 %v3298_v4, %s3592_s0 }
 0x56f   : > { %1856 = vrot.lane.b32.xlu1 %v1821_v2, %s3592_s0 }
 0x573   : > { %1862 = vrot.lane.b32.xlu1 %v4229_v5, %s3592_s0 }
 0x577   : > { %1860 = vrot.lane.b32.xlu1 %v1831_v6, %s3592_s0 }
 0x57b   : > { %1902 = vrot.lane.b32.xlu1 %v4206_v46, %s3592_s0 }
 0x5b1   : > { %v1891_v9 = vpop.permute.xlu1 %1890 }
 0x5b2   : > { %v1913_v10 = vadd.f32 %v3292_v54, %v1891_v9 }
 0x5b4   : > { %v1929_v11 = vmul.f32 %v4148_v19, %v1913_v10 }
 0x5b5   : > { %v1889_v31 = vpop.permute.xlu1 %1888 }
 0x5b6   : > { %v1912_v33 = vadd.f32 %v1889_v31, %v1801_v58 }
 0x5b8   : > { %v1928_v30 = vmul.f32 %v1912_v33, %v4150_v20 }
 0x5b9   : > { %v1893_v12 = vpop.permute.xlu1 %1892 }
 0x5ba   : > { %v1914_v32 = vadd.f32 %v1893_v12, %v1811_v63 }
 0x5bc   : > { %v1930_v13 = vmul.f32 %v1914_v32, %v4158_v21 }
 0x5c1   : > { %v1851_v26 = vpop.permute.xlu1 %1850 }
 0x5c2   : > { %v1873_v27 = vsub.f32 %v4182_v29, %v1851_v26 }
 0x5c4   : > { %v1921_v28 = vmul.f32 %v4110_v35, %v1873_v27  ;;  %v2385_v27 = vld [vmem:[%s3739_s3 + $0x18] sm:$0xff] }
 0x5c5   : > { %v1849_v37 = vpop.permute.xlu1 %1848  ;;  %v1855_v38 = vpop.permute.xlu0 %1854 }
 0x5c6   : > { %v1937_v40 = vadd.f32 %v1929_v11, %v1921_v28  ;;  %v1872_v48 = vsub.f32 %v4186_v36, %v1849_v37  ;;  %v1875_v19 = vsub.f32 %v4190_v39, %v1855_v38  ;;  %v2530_v28 = vld [vmem:[%s3748_s27] sm:$0xff]  ;;  %v2531_v37 = vld [vmem:[%s3748_s27 + $0x8] sm:$0xff] }
 0x5c7   : > { %v3462_v38 = vpack.c.bf16 %v2531_v37, %v2530_v28  ;;  %v3022_v28 = vld [vmem:[%s743_s13] ss:$0 sm:$0xff] }
 0x5c8   : > { %v1920_v49 = vmul.f32 %v1872_v48, %v4113_v14  ;;  %v1923_v20 = vmul.f32 %v4120_v15, %v1875_v19 }
 0x5c9   : > { %v1895_v54 = vpop.permute.xlu1 %1894 }
 0x5ca   : > { %v1936_v55 = vadd.f32 %v1928_v30, %v1920_v49  ;;  %v1915_v58 = vadd.f32 %v3295_v61, %v1895_v54 }
 0x5cc   : > { %3534 = vtanh.f32 %v1936_v55  ;;  %v1931_v21 = vmul.f32 %v4156_v42, %v1915_v58 }
 0x5cd   : > { %3536 = vtanh.f32 %v1937_v40  ;;  %v1897_v29 = vpop.permute.xlu1 %1896  ;;  %v3012_v40 = vld [vmem:[%s4427_s8] ss:$0 sm:$0xff] }
 0x5ce   : > { %v1939_v35 = vadd.f32 %v1931_v21, %v1923_v20  ;;  %v1916_v59 = vadd.f32 %v1897_v29, %v1821_v2 }
 0x5d0   : > { %v1932_v60 = vmul.f32 %v1916_v59, %v4166_v23 }
 0x5d1   : > { %v1899_v62 = vpop.permute.xlu1 %1898 }
 0x5d2   : > { %v1917_v36 = vadd.f32 %v3298_v4, %v1899_v62 }
 0x5d4   : > { %v1933_v39 = vmul.f32 %v4164_v22, %v1917_v36 }
 0x5d5   : > { %v1901_v63 = vpop.permute.xlu1 %1900 }
 0x5d6   : > { %v3535_v14 = vpop.eup %3534  ;;  %v1918_v7 = vadd.f32 %v1901_v63, %v1831_v6 }
 0x5d7   : > { %v3537_v15 = vpop.eup %3536  ;;  %3350 = vmatprep.mubr.msk.f32.mxu1 %vm1646_vm5, %v3535_v14 }
 0x5d8   : > { %v1934_v61 = vmul.f32 %v1918_v7, %v4174_v25  ;;  %3351 = vmatmul.mubr.msk.f32.vlgmr.msra.gmra.mrb[20].mxu1 %vm1646_vm5, %v3537_v15 }
 0x5d9   : > { %v1853_v42 = vpop.permute.xlu1 %1852 }
 0x5da   : > { %v1874_v0 = vsub.f32 %v4194_v41, %v1853_v42 }
 0x5dc   : > { %v1922_v2 = vmul.f32 %v1874_v0, %v4123_v16 }
 0x5dd   : > { %v1859_v23 = vpop.permute.xlu1 %1858 }
 0x5de   : > { %v1938_v8 = vadd.f32 %v1930_v13, %v1922_v2  ;;  %v1877_v4 = vsub.f32 %v4196_v44, %v1859_v23 }
 0x5e0   : > { %3538 = vtanh.f32 %v1938_v8  ;;  %v1925_v22 = vmul.f32 %v4130_v17, %v1877_v4  ;;  %v2532_v8 = vld [vmem:[%s3748_s27 + $0x10] sm:$0xff]  ;;  %v2533_v4 = vld [vmem:[%s3748_s27 + $0x18] sm:$0xff] }
 0x5e1   : > { %3540 = vtanh.f32 %v1939_v35  ;;  %v1857_v6 = vpop.permute.xlu1 %1856 }
 0x5e2   : > { %v1941_v9 = vadd.f32 %v1933_v39, %v1925_v22  ;;  %v1876_v10 = vsub.f32 %v4200_v45, %v1857_v6  ;;  %v3466_v22 = vpack.c.bf16 %v2533_v4, %v2532_v8  ;;  %v3013_v6 = vld [vmem:[%s735_s28] ss:$0 sm:$0xff] }
 0x5e4   : > { %v1924_v25 = vmul.f32 %v1876_v10, %v4134_v18 }
 0x5e5   : > { %v1863_v11 = vpop.permute.xlu1 %1862 }
 0x5e6   : > { %v1940_v31 = vadd.f32 %v1932_v60, %v1924_v25  ;;  %v1879_v41 = vsub.f32 %v4206_v46, %v1863_v11 }
 0x5e8   : > { %3542 = vtanh.f32 %v1940_v31  ;;  %v1927_v16 = vmul.f32 %v4140_v34, %v1879_v41 }
 0x5e9   : > { %3544 = vtanh.f32 %v1941_v9  ;;  %v1861_v33 = vpop.permute.xlu1 %1860 }
 0x5ea   : > { %v3539_v44 = vpop.eup %3538  ;;  %v1878_v30 = vsub.f32 %v4208_v47, %v1861_v33 }
 0x5eb   : > { %v3541_v17 = vpop.eup %3540  ;;  %3353 = vmatprep.mubr.msk.f32.mxu1 %vm1646_vm5, %v3539_v44 }
 0x5ec   : > { %v1926_v12 = vmul.f32 %v1878_v30, %v4142_v43  ;;  %3354 = vmatmul.mubr.msk.f32.gmra.mrb[22].mxu1 %vm1646_vm5, %v3541_v17 }
 0x5ed   : > { %v1903_v18 = vpop.permute.xlu1 %1902 }
 0x5ee   : > { %v1942_v45 = vadd.f32 %v1934_v61, %v1926_v12  ;;  %v1919_v46 = vadd.f32 %v4229_v5, %v1903_v18  ;;  %v2384_v5 = vld [vmem:[%s3739_s3 + $0x10] sm:$0xff] }
 0x5f0   : > { %3546 = vtanh.f32 %v1942_v45  ;;  %v1935_v34 = vmul.f32 %v4172_v24, %v1919_v46  ;;  %v3458_v24 = vpack.c.bf16 %v2385_v27, %v2384_v5 }
 0x5f2   : > { %v3543_v32 = vpop.eup %3542  ;;  %v1943_v47 = vadd.f32 %v1935_v34, %v1927_v16  ;;  %3459 = vmatprep.subr.bf16.mxu0 %v3458_v24 }
 0x5f3   : > { %v3545_v13 = vpop.eup %3544  ;;  %3356 = vmatprep.mubr.msk.f32.mxu1 %vm1646_vm5, %v3543_v32  ;;  %3461 = vmatpush3.bf16.msra.mxu0 %v3458_v24 }
 0x5f4   : > { %3548 = vtanh.f32 %v1943_v47  ;;  %3357 = vmatmul.mubr.msk.f32.gmra.mrb[24].mxu1 %vm1646_vm5, %v3545_v13  ;;  %3463 = vmatprep.subr.bf16.mxu0 %v3462_v38 }
 0x5fa   : > { %v3547_v43 = vpop.eup %3546 }
 0x5fb   : > { %3359 = vmatprep.mubr.msk.f32.mxu1 %vm1646_vm5, %v3547_v43 }
 0x5fe   : > { %v3549_v26 = vpop.eup %3548 }
 0x5ff   : > { %3360 = vmatmul.mubr.msk.f32.gmra.mrb[26].mxu1 %vm1646_vm5, %v3549_v26 }
 0x6ab   : > { %v3352_v48 = vpop.f32.mrb[20].mxu1 }
 0x6ac   : > { %v2367_v19 = vadd.f32 %v3352_v48, %v3012_v40  ;;  %v2312_v49 = vpop.f32.mrb[21].mxu1 }
 0x6ad   : > { %v2366_v20 = vadd.f32 %v3012_v40, %v2312_v49 }
 0x6ae   : > { %v2375_v55 = vmax.f32 %v2367_v19, 0.0 }
 0x6af   : > { %v2374_v54 = vmax.f32 %v2366_v20, 0.0 }
 0x6b1   : > { %3370 = vmatprep.mubr.msk.f32.mxu0 %vm1646_vm5, %v2374_v54 }
 0x6b2   : > { %3371 = vmatmul.mubr.msk.f32.vlgmr.msra.gmra.mrb[22].mxu0 %vm1646_vm5, %v2375_v55 }
 0x6b3   : > { %3465 = vmatpush3.bf16.msra.mxu0 %v3462_v38 }
 0x6b4   : > { %3467 = vmatprep.subr.bf16.mxu0 %v3466_v22 }
 0x6b7   : > { %3469 = vmatpush3.bf16.msra.mxu0 %v3466_v22 }
 0x6bf   : > { %v3355_v58 = vpop.f32.mrb[22].mxu1 }
 0x6c0   : > { %v2369_v21 = vadd.f32 %v3355_v58, %v3012_v40  ;;  %v2322_v29 = vpop.f32.mrb[23].mxu1 }
 0x6c1   : > { %v2368_v35 = vadd.f32 %v3012_v40, %v2322_v29 }
 0x6c2   : > { %v2377_v60 = vmax.f32 %v2369_v21, 0.0 }
 0x6c3   : > { %v2376_v59 = vmax.f32 %v2368_v35, 0.0 }
 0x6c5   : > { %3373 = vmatprep.mubr.msk.f32.mxu0 %vm1646_vm5, %v2376_v59 }
 0x6c6   : > { %3374 = vmatmul.mubr.msk.f32.gmra.mrb[24].mxu0 %vm1646_vm5, %v2377_v60 }
 0x6c7   : > { %v3358_v62 = vpop.f32.mrb[24].mxu1 }
 0x6c8   : > { %v2371_v36 = vadd.f32 %v3358_v62, %v3012_v40  ;;  %v2332_v39 = vpop.f32.mrb[25].mxu1 }
 0x6c9   : > { %v2370_v63 = vadd.f32 %v3012_v40, %v2332_v39 }
 0x6ca   : > { %v2379_v7 = vmax.f32 %v2371_v36, 0.0 }
 0x6cb   : > { %v2378_v14 = vmax.f32 %v2370_v63, 0.0 }
 0x6cd   : > { %3376 = vmatprep.mubr.msk.f32.mxu0 %vm1646_vm5, %v2378_v14 }
 0x6ce   : > { %3377 = vmatmul.mubr.msk.f32.gmra.mrb[26].mxu0 %vm1646_vm5, %v2379_v7 }
 0x6d2   : > { %v3361_v15 = vpop.f32.mrb[26].mxu1 }
 0x6d3   : > { %v2373_v61 = vadd.f32 %v3361_v15, %v3012_v40  ;;  %v2342_v42 = vpop.f32.mrb[27].mxu1 }
 0x6d4   : > { %v2372_v0 = vadd.f32 %v3012_v40, %v2342_v42 }
 0x6d5   : > { %v2381_v23 = vmax.f32 %v2373_v61, 0.0 }
 0x6d6   : > { %v2380_v2 = vmax.f32 %v2372_v0, 0.0 }
 0x6d8   : > { %3379 = vmatprep.mubr.msk.f32.mxu0 %vm1646_vm5, %v2380_v2 }
 0x6d9   : > { %3380 = vmatmul.mubr.msk.f32.gmra.mrb[28].mxu0 %vm1646_vm5, %v2381_v23 }
 0x785   : > { %v3372_v9 = vpop.f32.mrb[22].mxu0 }
 0x786   : > { %v2489_v10 = vadd.f32 %v3372_v9, %v3013_v6  ;;  %v2483_v25 = vpop.f32.mrb[23].mxu0 }
 0x787   : > { %v2484_v11 = vadd.f32 %v3013_v6, %v2483_v25 }
 0x788   : > { %v2523_v41 = vmax.f32 %v2489_v10, 0.0 }
 0x789   : > { %v2522_v31 = vmax.f32 %v2484_v11, 0.0 }
 0x78b   : > { %3390 = vmatprep.mubr.msk.f32.mxu0 %vm1646_vm5, %v2522_v31 }
 0x78c   : > { %3391 = vmatmul.mubr.msk.f32.vlgmr.msra.gmra.mrb[30].mxu0 %vm1646_vm5, %v2523_v41 }
 0x799   : > { %v3375_v16 = vpop.f32.mrb[24].mxu0 }
 0x79a   : > { %v2499_v33 = vadd.f32 %v3375_v16, %v3013_v6  ;;  %v2493_v44 = vpop.f32.mrb[25].mxu0 }
 0x79b   : > { %v2494_v30 = vadd.f32 %v3013_v6, %v2493_v44 }
 0x79c   : > { %v2525_v12 = vmax.f32 %v2499_v33, 0.0 }
 0x79d   : > { %v2524_v17 = vmax.f32 %v2494_v30, 0.0 }
 0x79f   : > { %3393 = vmatprep.mubr.msk.f32.mxu0 %vm1646_vm5, %v2524_v17 }
 0x7a0   : > { %3394 = vmatmul.mubr.msk.f32.gmra.mrb[32].mxu0 %vm1646_vm5, %v2525_v12 }
 0x7a1   : > { %v3378_v18 = vpop.f32.mrb[26].mxu0 }
 0x7a2   : > { %v2509_v45 = vadd.f32 %v3378_v18, %v3013_v6  ;;  %v2503_v46 = vpop.f32.mrb[27].mxu0 }
 0x7a3   : > { %v2504_v34 = vadd.f32 %v3013_v6, %v2503_v46 }
 0x7a4   : > { %v2527_v47 = vmax.f32 %v2509_v45, 0.0 }
 0x7a5   : > { %v2526_v32 = vmax.f32 %v2504_v34, 0.0 }
 0x7a7   : > { %3396 = vmatprep.mubr.msk.f32.mxu0 %vm1646_vm5, %v2526_v32 }
 0x7a8   : > { %3397 = vmatmul.mubr.msk.f32.gmra.mrb[34].mxu0 %vm1646_vm5, %v2527_v47 }
 0x7ac   : > { %v3381_v13 = vpop.f32.mrb[28].mxu0 }
 0x7ad   : > { %v2519_v43 = vadd.f32 %v3381_v13, %v3013_v6  ;;  %v2513_v26 = vpop.f32.mrb[29].mxu0 }
 0x7ae   : > { %v2514_v5 = vadd.f32 %v3013_v6, %v2513_v26 }
 0x7af   : > { %v2529_v24 = vmax.f32 %v2519_v43, 0.0 }
 0x7b0   : > { %v2528_v27 = vmax.f32 %v2514_v5, 0.0 }
 0x7b2   : > { %3399 = vmatprep.mubr.msk.f32.mxu0 %vm1646_vm5, %v2528_v27 }
 0x7b3   : > { %3400 = vmatmul.mubr.msk.f32.gmra.mrb[36].mxu0 %vm1646_vm5, %v2529_v24 }
 0x85f   : > { %v3392_v37 = vpop.f32.mrb[30].mxu0 }
 0x860   : > { %v2637_v38 = vadd.f32 %v3392_v37, %v3022_v28  ;;  %v2631_v40 = vpop.f32.mrb[31].mxu0 }
 0x861   : > { %v2632_v48 = vadd.f32 %v3022_v28, %v2631_v40 }
 0x862   : > { %v2671_v19 = vadd.f32 %v2637_v38, %v3951_v51 }
 0x863   : > { %v2670_v49 = vadd.f32 %v2632_v48, %v3949_v50 }
 0x864   : > { %2679 = vst.msk [vmem:[#allocation2 + $0x8] sm:$0xff] %vm1646_vm5, %v2671_v19 }
 0x865   : > { %2678 = vst.msk [vmem:[#allocation2] sm:$0xff] %vm1646_vm5, %v2670_v49 }
 0x873   : > { %v3395_v20 = vpop.f32.mrb[32].mxu0 }
 0x874   : > { %v2647_v54 = vadd.f32 %v3395_v20, %v3022_v28  ;;  %v2641_v55 = vpop.f32.mrb[33].mxu0 }
 0x875   : > { %v2642_v58 = vadd.f32 %v3022_v28, %v2641_v55 }
 0x876   : > { %v2673_v21 = vadd.f32 %v2647_v54, %v3955_v53 }
 0x877   : > { %v2672_v29 = vadd.f32 %v2642_v58, %v3953_v52 }
 0x878   : > { %2681 = vst.msk [vmem:[#allocation2 + $0x18] sm:$0xff] %vm1646_vm5, %v2673_v21 }
 0x879   : > { %2680 = vst.msk [vmem:[#allocation2 + $0x10] sm:$0xff] %vm1646_vm5, %v2672_v29 }
 0x87b   : > { %v3398_v35 = vpop.f32.mrb[34].mxu0 }
 0x87c   : > { %v2657_v51 = vadd.f32 %v3398_v35, %v3022_v28  ;;  %v2651_v59 = vpop.f32.mrb[35].mxu0 }
 0x87d   : > { %v2652_v50 = vadd.f32 %v3022_v28, %v2651_v59 }
 0x87e   : > { %v2675_v60 = vadd.f32 %v2657_v51, %v3963_v57 }
 0x87f   : > { %v2674_v62 = vadd.f32 %v2652_v50, %v3961_v56  ;;  %v3032_v56 = vld [vmem:[%s4428_s24] ss:$0 sm:$0xff] (!%p3031_p5) }
 0x880   : > { %2683 = vst.msk [vmem:[#allocation2 + $0x28] sm:$0xff] %vm1646_vm5, %v2675_v60  ;;  %v2699_v57 = vmul.f32 (!%p3031_p5), %v3032_v56, %v2672_v29  ;;  %v2697_v7 = vmul.f32 (!%p3031_p5), %v3032_v56, %v2670_v49  ;;  %v2700_v15 = vmul.f32 (!%p3031_p5), %v3032_v56, %v2673_v21  ;;  %v2698_v61 = vmul.f32 (!%p3031_p5), %v3032_v56, %v2671_v19 }
 0x881   : > { %2682 = vst.msk [vmem:[#allocation2 + $0x20] sm:$0xff] %vm1646_vm5, %v2674_v62  ;;  %v2702_v2 = vmul.f32 (!%p3031_p5), %v3032_v56, %v2675_v60  ;;  %v2701_v23 = vmul.f32 (!%p3031_p5), %v3032_v56, %v2674_v62 }
 0x882   : > { %v2711_v42 = vsel (!%p3031_p5), %vm1646_vm5, %v2699_v57, 0.0  ;;  %v2708_v0 = vsel (!%p3031_p5), %vm1646_vm5, %v2698_v61, 0.0 }
 0x883   : > { %2712 = vadd.xlane.f32.xlu1 (!%p3031_p5), %v2711_v42  ;;  %v2720_v8 = vsel (!%p3031_p5), %vm1646_vm5, %v2702_v2, 0.0  ;;  %v2717_v4 = vsel (!%p3031_p5), %vm1646_vm5, %v2701_v23, 0.0 }
 0x886   : > { %v3401_v36 = vpop.f32.mrb[36].mxu0  ;;  %2689 = sbr.rel (%p3031_p5) target bundleno = 2369 (0x941), region = 104 }
 0x887   : > { %v2667_v53 = vadd.f32 %v3401_v36, %v3022_v28  ;;  %v2661_v39 = vpop.f32.mrb[37].mxu0 }
 0x888   : > { %v2662_v52 = vadd.f32 %v3022_v28, %v2661_v39 }
 0x889   : > { %v2677_v63 = vadd.f32 %v2667_v53, %v3978_v3  ;;  %v2705_v3 = vsel (!%p3031_p5), %vm1646_vm5, %v2697_v7, 0.0 }
 0x88a   : > { %v2676_v14 = vadd.f32 %v2662_v52, %v3976_v1  ;;  %2706 = vadd.xlane.f32.xlu0 (!%p3031_p5), %v2705_v3  ;;  %v2714_v1 = vsel (!%p3031_p5), %vm1646_vm5, %v2700_v15, 0.0 }
 0x88b   : > { %2685 = vst.msk [vmem:[#allocation2 + $0x38] sm:$0xff] %vm1646_vm5, %v2677_v63  ;;  %2715 = vadd.xlane.f32.xlu1 (!%p3031_p5), %v2714_v1  ;;  %v2704_v22 = vmul.f32 (!%p3031_p5), %v3032_v56, %v2677_v63 }
 0x88c   : > { %2684 = vst.msk [vmem:[#allocation2 + $0x30] sm:$0xff] %vm1646_vm5, %v2676_v14  ;;  %v2703_v6 = vmul.f32 (!%p3031_p5), %v3032_v56, %v2676_v14 }
 0x88d   : > { %v2726_v9 = vsel %vm1646_vm5, %v2704_v22, 0.0 }
 0x88e   : > { %2709 = vadd.xlane.f32.xlu0 %v2708_v0  ;;  %v2723_v10 = vsel %vm1646_vm5, %v2703_v6, 0.0 }
 0x88f   : > { %2721 = vadd.xlane.f32.xlu1 %v2720_v8 }
 0x892   : > { %2718 = vadd.xlane.f32.xlu0 %v2717_v4 }
 0x893   : > { %2727 = vadd.xlane.f32.xlu1 %v2726_v9 }
 0x896   : > { %2724 = vadd.xlane.f32.xlu0 %v2723_v10 }
 0x910   : > { %v2713_v25 = vpop.xlane.xlu1 %2712 }
 0x911   : > { %v3035_v31 = vmul.f32 -1.442695, %v2713_v25 }
 0x913   : > { %3550 = vpow2.f32 %v3035_v31 }
 0x917   : > { %v2707_v11 = vpop.xlane.xlu0 %2706 }
 0x918   : > { %v3033_v41 = vmul.f32 -1.442695, %v2707_v11  ;;  %v2716_v16 = vpop.xlane.xlu1 %2715 }
 0x919   : > { %v3036_v44 = vmul.f32 -1.442695, %v2716_v16 }
 0x91a   : > { %3552 = vpow2.f32 %v3033_v41 }
 0x91b   : > { %v2710_v33 = vpop.xlane.xlu0 %2709  ;;  %3554 = vpow2.f32 %v3036_v44 }
 0x91c   : > { %v3034_v30 = vmul.f32 -1.442695, %v2710_v33  ;;  %v2722_v17 = vpop.xlane.xlu1 %2721 }
 0x91d   : > { %v3038_v18 = vmul.f32 -1.442695, %v2722_v17  ;;  %v3551_v32 = vpop.eup %3550 }
 0x91e   : > { %3556 = vpow2.f32 %v3034_v30  ;;  %v2755_v43 = vadd.f32 1.0, %v3551_v32 }
 0x91f   : > { %v2719_v12 = vpop.xlane.xlu0 %2718  ;;  %3558 = vpow2.f32 %v3038_v18 }
 0x920   : > { %v3037_v45 = vmul.f32 -1.442695, %v2719_v12  ;;  %v2728_v46 = vpop.xlane.xlu1 %2727 }
 0x921   : > { %v3040_v47 = vmul.f32 -1.442695, %v2728_v46 }
 0x922   : > { %3560 = vpow2.f32 %v3037_v45 }
 0x923   : > { %v2725_v34 = vpop.xlane.xlu0 %2724  ;;  %3562 = vpow2.f32 %v3040_v47 }
 0x924   : > { %v3553_v13 = vpop.eup %3552  ;;  %v3039_v26 = vmul.f32 -1.442695, %v2725_v34  ;;  %3564 = vrcp.f32 %v2755_v43 }
 0x925   : > { %v2753_v5 = vadd.f32 1.0, %v3553_v13  ;;  %v3555_v27 = vpop.eup %3554 }
 0x926   : > { %v2756_v28 = vadd.f32 1.0, %v3555_v27 }
 0x927   : > { %3566 = vrcp.f32 %v2753_v5 }
 0x928   : > { %v3557_v24 = vpop.eup %3556  ;;  %3568 = vpow2.f32 %v3039_v26 }
 0x929   : > { %v2754_v37 = vadd.f32 1.0, %v3557_v24  ;;  %3570 = vrcp.f32 %v2756_v28  ;;  %v3559_v38 = vpop.eup %3558 }
 0x92a   : > { %v2758_v48 = vadd.f32 1.0, %v3559_v38 }
 0x92b   : > { %3572 = vrcp.f32 %v2754_v37 }
 0x92c   : > { %v3561_v40 = vpop.eup %3560  ;;  %3574 = vrcp.f32 %v2758_v48 }
 0x92d   : > { %v2757_v19 = vadd.f32 1.0, %v3561_v40  ;;  %v3563_v49 = vpop.eup %3562 }
 0x92e   : > { %v3565_v20 = vpop.eup %3564  ;;  %v2760_v54 = vadd.f32 1.0, %v3563_v49 }
 0x92f   : > { %3576 = vrcp.f32 %v2757_v19  ;;  %2780 = vst.msk [vmem:[%s4429_s26 + $0x10] sm:$0xff] %vm2777_vm6, %v3565_v20 }
 0x930   : > { %3578 = vrcp.f32 %v2760_v54 }
 0x931   : > { %v3567_v55 = vpop.eup %3566 }
 0x932   : > { %v3569_v58 = vpop.eup %3568  ;;  %2778 = vst.msk [vmem:[%s4429_s26] sm:$0xff] %vm2777_vm6, %v3567_v55 }
 0x933   : > { %v2759_v21 = vadd.f32 1.0, %v3569_v58  ;;  %v3571_v29 = vpop.eup %3570 }
 0x934   : > { %2781 = vst.msk [vmem:[%s4429_s26 + $0x18] sm:$0xff] %vm2777_vm6, %v3571_v29 }
 0x935   : > { %v3573_v35 = vpop.eup %3572  ;;  %3580 = vrcp.f32 %v2759_v21 }
 0x936   : > { %2779 = vst.msk [vmem:[%s4429_s26 + $0x8] sm:$0xff] %vm2777_vm6, %v3573_v35  ;;  %v3575_v51 = vpop.eup %3574 }
 0x937   : > { %2783 = vst.msk [vmem:[%s4429_s26 + $0x28] sm:$0xff] %vm2777_vm6, %v3575_v51 }
 0x939   : > { %v3577_v59 = vpop.eup %3576 }
 0x93a   : > { %2782 = vst.msk [vmem:[%s4429_s26 + $0x20] sm:$0xff] %vm2777_vm6, %v3577_v59  ;;  %v3579_v50 = vpop.eup %3578 }
 0x93b   : > { %2785 = vst.msk [vmem:[%s4429_s26 + $0x38] sm:$0xff] %vm2777_vm6, %v3579_v50 }
 0x93f   : > { %v3581_v60 = vpop.eup %3580 }
 0x940   : > { %2784 = vst.msk [vmem:[%s4429_s26 + $0x30] sm:$0xff] %vm2777_vm6, %v3581_v60 }
 0x941 PF: > { %s4430_s20 = sld [smem:[#allocation3_spill]] }
 0x947   : > { %s29_s0 = sadd.s32 1, %s4430_s20  }
 0x948   : > { %p26_p6 = scmp.ge.s32.totalorder %s29_s0, 6  }
 0x94a   :  { %28 = sbr.rel (!%p26_p6) target bundleno = 11 (0xb), region = 157 }

</bundles_post_ra>
